<compile_context>
chip_gen: v7x
topology: tpu7x:2x2x1
jax: 0.10.0
libtpu: 0.0.40
codegen_flags: <defaults>
</compile_context>

<pallas_src>
import math
import jax
import jax.numpy as jnp
from jax.experimental import pallas as pl
from jax.experimental.pallas import tpu as pltpu

# ----------------------------- model config ---------------------------------
D_MODEL = 32          # args.d
N_LAYERS = 2          # args.l
NUM_HEADS = 2         # args.num_heads
HEAD_DIM = D_MODEL // NUM_HEADS
VOCAB = 64
MAX_POS = 16
NEG_INF = -1e9
LN_EPS = 1e-5


# --------------------------- fused Pallas kernel -----------------------------
def _fused_gpt2_kernel(
    x_ref,        # (B*T, D)           f32   embedded input (flattened)
    mask_ref,     # (B, 1, T)          int32 padding mask (1 = real token)
    qkv_w_ref,    # (L, 3, H, D, Dh)   bf16  pre-split per-head q/k/v projections
    cproj_w_ref,  # (L, H, Dh, D)      bf16  c_proj rows per head
    fc_w_ref,     # (L, D, 4D)         bf16
    mproj_w_ref,  # (L, 4D, D)         bf16
    vec_ref,      # (L+1, 8, D)        f32   [ln1_g,ln1_b,bq,bk,bv,cproj_b,ln2_g,ln2_b];
                  #                          row L holds [lnf_g, lnf_b, 0...]
    mlp_b_ref,    # (L, 2, 4D)         f32   [fc_b ; proj_b (padded)]
    o_ref,        # (B*T, D)           f32   final hidden states
):
    BT, D = x_ref.shape
    B, _, T = mask_ref.shape
    H = NUM_HEADS
    Dh = D // H
    scale = 1.0 / math.sqrt(float(Dh))
    gelu_c = math.sqrt(2.0 / math.pi)
    bf16 = jnp.bfloat16

    def layernorm(h, g, b):
        mu = jnp.mean(h, axis=-1, keepdims=True)
        var = jnp.mean((h - mu) ** 2, axis=-1, keepdims=True)
        return (h - mu) * jax.lax.rsqrt(var + LN_EPS) * g + b

    # ---- mask, layer-invariant: compute once (hoisted out of the layer loop) ----
    row = jax.lax.broadcasted_iota(jnp.int32, (T, T), 0)
    col = jax.lax.broadcasted_iota(jnp.int32, (T, T), 1)
    causal = col <= row                                     # (T, T) bool
    pad_ok = mask_ref[...] != 0                             # (B, 1, T) bool
    allowed = jnp.logical_and(causal[None, :, :], pad_ok)   # (B, T, T)

    x = x_ref[...]                                          # (B*T, D) f32

    for li in range(N_LAYERS):
        # ---------------- self-attention block (pre-LN) ----------------
        h = layernorm(x, vec_ref[li, 0:1], vec_ref[li, 1:2])
        hb = h.astype(bf16)

        a = jnp.zeros((BT, D), jnp.float32)
        for hd in range(H):                                  # static unroll, H=2
            lo, hi = hd * Dh, (hd + 1) * Dh
            # per-head projections from static Ref slices (no value lane slicing)
            q = jnp.dot(hb, qkv_w_ref[li, 0, hd],
                        preferred_element_type=jnp.float32) + vec_ref[li, 2:3, lo:hi]
            k = jnp.dot(hb, qkv_w_ref[li, 1, hd],
                        preferred_element_type=jnp.float32) + vec_ref[li, 3:4, lo:hi]
            v = jnp.dot(hb, qkv_w_ref[li, 2, hd],
                        preferred_element_type=jnp.float32) + vec_ref[li, 4:5, lo:hi]

            # (B*T, Dh) -> (B, T, Dh): sublane-aligned split (T == 8), free reshape
            q3 = q.reshape(B, T, Dh).astype(bf16)
            k3 = k.reshape(B, T, Dh).astype(bf16)
            v3 = v.reshape(B, T, Dh).astype(bf16)

            # batched over B in one contraction; no k transpose, no concatenates
            s = jnp.einsum('bqd,bkd->bqk', q3, k3,
                           preferred_element_type=jnp.float32) * scale   # (B,T,T)
            s = jnp.where(allowed, s, NEG_INF)
            s = s - jnp.max(s, axis=-1, keepdims=True)
            p = jnp.exp(s)
            # approx reciprocal (EUP); ~1e-3 rel. error vs exact division
            p = p * pl.reciprocal(jnp.sum(p, axis=-1, keepdims=True), approx=True)

            o3 = jnp.einsum('bqk,bkd->bqd', p.astype(bf16), v3,
                            preferred_element_type=jnp.float32)          # (B,T,Dh)
            o2 = o3.reshape(BT, Dh).astype(bf16)
            # head-merge folded into c_proj: concat_h(o_h) @ Wp == sum_h o_h @ Wp[h]
            a = a + jnp.dot(o2, cproj_w_ref[li, hd],
                            preferred_element_type=jnp.float32)

        x = x + a + vec_ref[li, 5:6]                        # + c_proj bias, residual

        # ---------------------- MLP block (pre-LN) ----------------------
        h = layernorm(x, vec_ref[li, 6:7], vec_ref[li, 7:8])
        hh = jnp.dot(h.astype(bf16), fc_w_ref[li],
                     preferred_element_type=jnp.float32) + mlp_b_ref[li, 0:1]
        # GPT-2 "gelu_new" (tanh approximation); tanh goes to EUP, kept in f32
        hh = 0.5 * hh * (1.0 + jnp.tanh(gelu_c * (hh + 0.044715 * hh * hh * hh)))
        m = jnp.dot(hh.astype(bf16), mproj_w_ref[li],
                    preferred_element_type=jnp.float32) + mlp_b_ref[li, 1:2, 0:D]
        x = x + m

    # final layer norm (packed in the last row of vec_ref)
    x = layernorm(x, vec_ref[N_LAYERS, 0:1], vec_ref[N_LAYERS, 1:2])
    o_ref[...] = x.astype(o_ref.dtype)


def fused_gpt2(x2d, mask_b1t, params):
    """Single pallas_call for the whole transformer stack.  x2d: (B*T, D) -> (B*T, D)."""
    BT, D = x2d.shape
    # No grid: a 1-step pipelined grid only adds prologue + double-buffered VMEM.
    # Every operand is a single full-array VMEM block (total footprint << VMEM).
    # TODO(synk): at real GPT-2 dims, switch to a layer-axis grid ("arbitrary") with
    # per-layer weight BlockSpecs so weights stream through VMEM one layer at a time.
    return pl.pallas_call(
        _fused_gpt2_kernel,
        out_shape=jax.ShapeDtypeStruct((BT, D), jnp.float32),
        compiler_params=pltpu.CompilerParams(vmem_limit_bytes=32 * 1024 * 1024),
    )(
        x2d, mask_b1t,
        params["qkv_w"], params["cproj_w"],
        params["fc_w"], params["mproj_w"],
        params["vec"], params["mlp_b"],
    )


# ------------------------------ parameters ----------------------------------
def init_params(key):
    """Build GPT-2-style params already packed into the kernel's input layout."""
    D, F4, H, Dh, L = D_MODEL, 4 * D_MODEL, NUM_HEADS, HEAD_DIM, N_LAYERS

    def normal(k, shape, std=0.02):
        return (std * jax.random.normal(k, shape)).astype(jnp.float32)

    keys = jax.random.split(key, 3 + L)

    qkv_w, cproj_w, fc_w, mproj_w, vec, mlp_b = [], [], [], [], [], []
    for li in range(L):
        lk = jax.random.split(keys[3 + li], 4)
        c_attn_w = normal(lk[0], (D, 3 * D))        # x @ W + b, columns = [Q | K | V]
        c_attn_b = jnp.zeros((3 * D,), jnp.float32)
        c_proj_w = normal(lk[1], (D, D))
        c_proj_b = jnp.zeros((D,), jnp.float32)
        fc_w_l = normal(lk[2], (D, F4))
        fc_b_l = jnp.zeros((F4,), jnp.float32)
        proj_w_l = normal(lk[3], (F4, D))
        proj_b_l = jnp.zeros((D,), jnp.float32)
        ln1_g = jnp.ones((D,), jnp.float32); ln1_b = jnp.zeros((D,), jnp.float32)
        ln2_g = jnp.ones((D,), jnp.float32); ln2_b = jnp.zeros((D,), jnp.float32)

        # pre-split q/k/v per head: (3, H, D, Dh); qkv_w[s, h] = W[:, s*D + h*Dh : ...]
        qkv_w.append(c_attn_w.reshape(D, 3, H, Dh).transpose(1, 2, 0, 3))
        # c_proj rows per head: (H, Dh, D); sum_h o_h @ cproj_w[h] == concat(o) @ W
        cproj_w.append(c_proj_w.reshape(H, Dh, D))
        fc_w.append(fc_w_l)
        mproj_w.append(proj_w_l)

        bqkv = c_attn_b.reshape(3, D)
        vec.append(jnp.stack([ln1_g, ln1_b, bqkv[0], bqkv[1], bqkv[2],
                              c_proj_b, ln2_g, ln2_b]))                 # (8, D)
        mlp_b.append(jnp.stack([
            fc_b_l,
            jnp.concatenate([proj_b_l, jnp.zeros((F4 - D,), jnp.float32)])]))  # (2, 4D)

    # final LayerNorm packed as an extra "layer" entry: row0 = gamma(=1), row1 = beta(=0)
    vec.append(jnp.zeros((8, D), jnp.float32).at[0].set(1.0))

    return {
        "wte": normal(keys[0], (VOCAB, D)),
        "wpe": normal(keys[1], (MAX_POS, D)),
        "head_w": normal(keys[2], (D, 2)),
        "head_b": jnp.zeros((2,), jnp.float32),
        # packed kernel inputs (weight matrices in bf16, vectors in f32)
        "qkv_w": jnp.stack(qkv_w).astype(jnp.bfloat16),      # (L, 3, H, D, Dh)
        "cproj_w": jnp.stack(cproj_w).astype(jnp.bfloat16),  # (L, H, Dh, D)
        "fc_w": jnp.stack(fc_w).astype(jnp.bfloat16),        # (L, D, 4D)
        "mproj_w": jnp.stack(mproj_w).astype(jnp.bfloat16),  # (L, 4D, D)
        "vec": jnp.stack(vec),                               # (L+1, 8, D) f32
        "mlp_b": jnp.stack(mlp_b),                           # (L, 2, 4D) f32
    }


# ------------------------------- forward ------------------------------------
def paraphrase_gpt_forward(params, input_ids, attention_mask):
    B, T = input_ids.shape
    # embeddings (glue, stays in JAX)
    x = params["wte"][input_ids] + params["wpe"][jnp.arange(T)][None, :, :]
    x2d = x.reshape(B * T, D_MODEL).astype(jnp.float32)       # reshape in the wrapper
    mask_b1t = attention_mask.astype(jnp.int32).reshape(B, 1, T)

    # whole transformer in one fused, VMEM-resident Pallas kernel
    seq2d = fused_gpt2(x2d, mask_b1t, params)                 # (B*T, D)
    sequence_output = seq2d.reshape(B, T, D_MODEL)

    # last-real-token gather + tiny 2-way head kept in plain JAX
    # (assumes a left-aligned attention mask, the usual HF convention)
    last_token_indices = jnp.sum(attention_mask, axis=1) - 1  # (B,)
    last_token_embeddings = sequence_output[jnp.arange(B), last_token_indices]
    logits = last_token_embeddings @ params["head_w"] + params["head_b"]   # (B, 2)
    return logits


# --------------------------------- main --------------------------------------
if __name__ == "__main__":
    key = jax.random.PRNGKey(0)
    pkey, ikey = jax.random.split(key)

    params = init_params(pkey)

    B, T = 2, 8
    input_ids = jax.random.randint(ikey, (B, T), 0, VOCAB, dtype=jnp.int32)
    # first sequence full length, second padded after 5 tokens
    attention_mask = jnp.array(
        [[1, 1, 1, 1, 1, 1, 1, 1],
         [1, 1, 1, 1, 1, 0, 0, 0]], dtype=jnp.int32)

    fwd = jax.jit(paraphrase_gpt_forward)
    logits = fwd(params, input_ids, attention_mask)
    logits = jax.block_until_ready(logits)
    assert logits.shape == (B, 2) and logits.dtype == jnp.float32
    print("KERNEL_OK")
</pallas_src>

<mosaic_0001>
module attributes {stable_mosaic.version = 11 : i64} {
  func.func @_fused_gpt2_kernel(%arg0: memref<16x32xf32, #tpu.memory_space<vmem>>, %arg1: memref<2x1x8xi32, #tpu.memory_space<vmem>>, %arg2: memref<2x3x2x32x16xbf16, #tpu.memory_space<vmem>>, %arg3: memref<2x2x16x32xbf16, #tpu.memory_space<vmem>>, %arg4: memref<2x32x128xbf16, #tpu.memory_space<vmem>>, %arg5: memref<2x128x32xbf16, #tpu.memory_space<vmem>>, %arg6: memref<3x8x32xf32, #tpu.memory_space<vmem>>, %arg7: memref<2x2x128xf32, #tpu.memory_space<vmem>>, %arg8: memref<16x32xf32, #tpu.memory_space<vmem>>) attributes {dimension_semantics = [], scalar_prefetch = 0 : i64, scratch_operands = 0 : i64, tpu.core_type = #tpu.core_type<tc>} {
    %0 = tpu.iota {dimensions = array<i32: 0>} : vector<8x8xi32>
    %1 = tpu.iota {dimensions = array<i32: 1>} : vector<8x8xi32>
    %2 = arith.cmpi sle, %1, %0 : vector<8x8xi32>
    %c0 = arith.constant 0 : index
    %c0_0 = arith.constant 0 : index
    %c0_1 = arith.constant 0 : index
    %3 = vector.load %arg1[%c0, %c0_0, %c0_1] : memref<2x1x8xi32, #tpu.memory_space<vmem>>, vector<2x1x8xi32>
    %c0_i32 = arith.constant 0 : i32
    %4 = vector.broadcast %c0_i32 : i32 to vector<2x1x8xi32>
    %5 = arith.cmpi ne, %3, %4 : vector<2x1x8xi32>
    %6 = vector.shape_cast %2 : vector<8x8xi1> to vector<1x8x8xi1>
    %7 = vector.broadcast %6 : vector<1x8x8xi1> to vector<2x8x8xi1>
    %8 = vector.broadcast %5 : vector<2x1x8xi1> to vector<2x8x8xi1>
    %9 = arith.andi %7, %8 : vector<2x8x8xi1>
    %c0_2 = arith.constant 0 : index
    %c0_3 = arith.constant 0 : index
    %10 = vector.load %arg0[%c0_2, %c0_3] : memref<16x32xf32, #tpu.memory_space<vmem>>, vector<16x32xf32>
    %c0_4 = arith.constant 0 : index
    %c0_5 = arith.constant 0 : index
    %c0_6 = arith.constant 0 : index
    %11 = vector.load %arg6[%c0_4, %c0_5, %c0_6] : memref<3x8x32xf32, #tpu.memory_space<vmem>>, vector<1x1x32xf32>
    %12 = vector.shape_cast %11 : vector<1x1x32xf32> to vector<1x32xf32>
    %c0_7 = arith.constant 0 : index
    %c1 = arith.constant 1 : index
    %c0_8 = arith.constant 0 : index
    %13 = vector.load %arg6[%c0_7, %c1, %c0_8] : memref<3x8x32xf32, #tpu.memory_space<vmem>>, vector<1x1x32xf32>
    %14 = vector.shape_cast %13 : vector<1x1x32xf32> to vector<1x32xf32>
    %cst = arith.constant dense<0.000000e+00> : vector<16xf32>
    %15 = vector.multi_reduction <add>, %10, %cst [1] : vector<16x32xf32> to vector<16xf32>
    %16 = vector.shape_cast %15 : vector<16xf32> to vector<16x1xf32>
    %cst_9 = arith.constant 3.200000e+01 : f32
    %17 = vector.broadcast %cst_9 : f32 to vector<16x1xf32>
    %18 = arith.divf %16, %17 : vector<16x1xf32>
    %19 = vector.broadcast %18 : vector<16x1xf32> to vector<16x32xf32>
    %20 = arith.subf %10, %19 : vector<16x32xf32>
    %21 = arith.mulf %20, %20 : vector<16x32xf32>
    %cst_10 = arith.constant dense<0.000000e+00> : vector<16xf32>
    %22 = vector.multi_reduction <add>, %21, %cst_10 [1] : vector<16x32xf32> to vector<16xf32>
    %23 = vector.shape_cast %22 : vector<16xf32> to vector<16x1xf32>
    %cst_11 = arith.constant 3.200000e+01 : f32
    %24 = vector.broadcast %cst_11 : f32 to vector<16x1xf32>
    %25 = arith.divf %23, %24 : vector<16x1xf32>
    %26 = vector.broadcast %18 : vector<16x1xf32> to vector<16x32xf32>
    %27 = arith.subf %10, %26 : vector<16x32xf32>
    %cst_12 = arith.constant 9.99999974E-6 : f32
    %28 = vector.broadcast %cst_12 : f32 to vector<16x1xf32>
    %29 = arith.addf %25, %28 : vector<16x1xf32>
    %30 = math.rsqrt %29 : vector<16x1xf32>
    %31 = vector.broadcast %30 : vector<16x1xf32> to vector<16x32xf32>
    %32 = arith.mulf %27, %31 : vector<16x32xf32>
    %33 = vector.broadcast %12 : vector<1x32xf32> to vector<16x32xf32>
    %34 = arith.mulf %32, %33 : vector<16x32xf32>
    %35 = vector.broadcast %14 : vector<1x32xf32> to vector<16x32xf32>
    %36 = arith.addf %34, %35 : vector<16x32xf32>
    %37 = arith.truncf %36 : vector<16x32xf32> to vector<16x32xbf16>
    %cst_13 = arith.constant 0.000000e+00 : f32
    %38 = vector.broadcast %cst_13 : f32 to vector<16x32xf32>
    %c0_14 = arith.constant 0 : index
    %c0_15 = arith.constant 0 : index
    %c0_16 = arith.constant 0 : index
    %c0_17 = arith.constant 0 : index
    %c0_18 = arith.constant 0 : index
    %39 = vector.load %arg2[%c0_14, %c0_15, %c0_16, %c0_17, %c0_18] : memref<2x3x2x32x16xbf16, #tpu.memory_space<vmem>>, vector<1x1x1x32x16xbf16>
    %40 = vector.shape_cast %39 : vector<1x1x1x32x16xbf16> to vector<32x16xbf16>
    %cst_19 = arith.constant dense<0.000000e+00> : vector<16x16xf32>
    %41 = tpu.matmul %37, %40, %cst_19 {dimension_numbers = #tpu.dot_dimension_numbers<[1], [0], [0], [1], [0, 0, 1, 1], [], []>} : vector<16x32xbf16>, vector<32x16xbf16>, vector<16x16xf32> -> vector<16x16xf32>
    %c0_20 = arith.constant 0 : index
    %c2 = arith.constant 2 : index
    %c0_21 = arith.constant 0 : index
    %42 = vector.load %arg6[%c0_20, %c2, %c0_21] : memref<3x8x32xf32, #tpu.memory_space<vmem>>, vector<1x1x16xf32>
    %43 = vector.shape_cast %42 : vector<1x1x16xf32> to vector<1x16xf32>
    %44 = vector.broadcast %43 : vector<1x16xf32> to vector<16x16xf32>
    %45 = arith.addf %41, %44 : vector<16x16xf32>
    %c0_22 = arith.constant 0 : index
    %c1_23 = arith.constant 1 : index
    %c0_24 = arith.constant 0 : index
    %c0_25 = arith.constant 0 : index
    %c0_26 = arith.constant 0 : index
    %46 = vector.load %arg2[%c0_22, %c1_23, %c0_24, %c0_25, %c0_26] : memref<2x3x2x32x16xbf16, #tpu.memory_space<vmem>>, vector<1x1x1x32x16xbf16>
    %47 = vector.shape_cast %46 : vector<1x1x1x32x16xbf16> to vector<32x16xbf16>
    %cst_27 = arith.constant dense<0.000000e+00> : vector<16x16xf32>
    %48 = tpu.matmul %37, %47, %cst_27 {dimension_numbers = #tpu.dot_dimension_numbers<[1], [0], [0], [1], [0, 0, 1, 1], [], []>} : vector<16x32xbf16>, vector<32x16xbf16>, vector<16x16xf32> -> vector<16x16xf32>
    %c0_28 = arith.constant 0 : index
    %c3 = arith.constant 3 : index
    %c0_29 = arith.constant 0 : index
    %49 = vector.load %arg6[%c0_28, %c3, %c0_29] : memref<3x8x32xf32, #tpu.memory_space<vmem>>, vector<1x1x16xf32>
    %50 = vector.shape_cast %49 : vector<1x1x16xf32> to vector<1x16xf32>
    %51 = vector.broadcast %50 : vector<1x16xf32> to vector<16x16xf32>
    %52 = arith.addf %48, %51 : vector<16x16xf32>
    %c0_30 = arith.constant 0 : index
    %c2_31 = arith.constant 2 : index
    %c0_32 = arith.constant 0 : index
    %c0_33 = arith.constant 0 : index
    %c0_34 = arith.constant 0 : index
    %53 = vector.load %arg2[%c0_30, %c2_31, %c0_32, %c0_33, %c0_34] : memref<2x3x2x32x16xbf16, #tpu.memory_space<vmem>>, vector<1x1x1x32x16xbf16>
    %54 = vector.shape_cast %53 : vector<1x1x1x32x16xbf16> to vector<32x16xbf16>
    %cst_35 = arith.constant dense<0.000000e+00> : vector<16x16xf32>
    %55 = tpu.matmul %37, %54, %cst_35 {dimension_numbers = #tpu.dot_dimension_numbers<[1], [0], [0], [1], [0, 0, 1, 1], [], []>} : vector<16x32xbf16>, vector<32x16xbf16>, vector<16x16xf32> -> vector<16x16xf32>
    %c0_36 = arith.constant 0 : index
    %c4 = arith.constant 4 : index
    %c0_37 = arith.constant 0 : index
    %56 = vector.load %arg6[%c0_36, %c4, %c0_37] : memref<3x8x32xf32, #tpu.memory_space<vmem>>, vector<1x1x16xf32>
    %57 = vector.shape_cast %56 : vector<1x1x16xf32> to vector<1x16xf32>
    %58 = vector.broadcast %57 : vector<1x16xf32> to vector<16x16xf32>
    %59 = arith.addf %55, %58 : vector<16x16xf32>
    %60 = vector.shape_cast %45 : vector<16x16xf32> to vector<2x8x16xf32>
    %61 = arith.truncf %60 : vector<2x8x16xf32> to vector<2x8x16xbf16>
    %62 = vector.shape_cast %52 : vector<16x16xf32> to vector<2x8x16xf32>
    %63 = arith.truncf %62 : vector<2x8x16xf32> to vector<2x8x16xbf16>
    %64 = vector.shape_cast %59 : vector<16x16xf32> to vector<2x8x16xf32>
    %65 = arith.truncf %64 : vector<2x8x16xf32> to vector<2x8x16xbf16>
    "tpu.trace_start"() <{level = 10 : i32, message = "bqd,bkd->bqk"}> : () -> ()
    %cst_38 = arith.constant dense<0.000000e+00> : vector<2x8x8xf32>
    %66 = tpu.matmul %61, %63, %cst_38 {dimension_numbers = #tpu.dot_dimension_numbers<[2], [2], [1], [1], [0, 0, 0, 1, 1, 1], [0], [0]>} : vector<2x8x16xbf16>, vector<2x8x16xbf16>, vector<2x8x8xf32> -> vector<2x8x8xf32>
    "tpu.trace_stop"() : () -> ()
    %cst_39 = arith.constant 2.500000e-01 : f32
    %67 = vector.broadcast %cst_39 : f32 to vector<2x8x8xf32>
    %68 = arith.mulf %66, %67 : vector<2x8x8xf32>
    %cst_40 = arith.constant -1.000000e+09 : f32
    %69 = vector.broadcast %cst_40 : f32 to vector<2x8x8xf32>
    %70 = arith.select %9, %68, %69 : vector<2x8x8xi1>, vector<2x8x8xf32>
    %cst_41 = arith.constant dense<0xFF800000> : vector<2x8xf32>
    %71 = vector.multi_reduction <maximumf>, %70, %cst_41 [2] : vector<2x8x8xf32> to vector<2x8xf32>
    %72 = vector.shape_cast %71 : vector<2x8xf32> to vector<2x8x1xf32>
    %73 = vector.broadcast %72 : vector<2x8x1xf32> to vector<2x8x8xf32>
    %74 = arith.subf %70, %73 : vector<2x8x8xf32>
    %75 = math.exp %74 : vector<2x8x8xf32>
    %cst_42 = arith.constant dense<0.000000e+00> : vector<2x8xf32>
    %76 = vector.multi_reduction <add>, %75, %cst_42 [2] : vector<2x8x8xf32> to vector<2x8xf32>
    %77 = vector.shape_cast %76 : vector<2x8xf32> to vector<2x8x1xf32>
    %78 = tpu.reciprocal %77 {approx = true} : vector<2x8x1xf32> -> vector<2x8x1xf32>
    %79 = vector.broadcast %78 : vector<2x8x1xf32> to vector<2x8x8xf32>
    %80 = arith.mulf %75, %79 : vector<2x8x8xf32>
    %81 = arith.truncf %80 : vector<2x8x8xf32> to vector<2x8x8xbf16>
    "tpu.trace_start"() <{level = 10 : i32, message = "bqk,bkd->bqd"}> : () -> ()
    %cst_43 = arith.constant dense<0.000000e+00> : vector<2x8x16xf32>
    %82 = tpu.matmul %81, %65, %cst_43 {dimension_numbers = #tpu.dot_dimension_numbers<[2], [1], [1], [2], [0, 0, 0, 1, 1, 2], [0], [0]>} : vector<2x8x8xbf16>, vector<2x8x16xbf16>, vector<2x8x16xf32> -> vector<2x8x16xf32>
    "tpu.trace_stop"() : () -> ()
    %83 = vector.shape_cast %82 : vector<2x8x16xf32> to vector<16x16xf32>
    %84 = arith.truncf %83 : vector<16x16xf32> to vector<16x16xbf16>
    %c0_44 = arith.constant 0 : index
    %c0_45 = arith.constant 0 : index
    %c0_46 = arith.constant 0 : index
    %c0_47 = arith.constant 0 : index
    %85 = vector.load %arg3[%c0_44, %c0_45, %c0_46, %c0_47] : memref<2x2x16x32xbf16, #tpu.memory_space<vmem>>, vector<1x1x16x32xbf16>
    %86 = vector.shape_cast %85 : vector<1x1x16x32xbf16> to vector<16x32xbf16>
    %cst_48 = arith.constant dense<0.000000e+00> : vector<16x32xf32>
    %87 = tpu.matmul %84, %86, %cst_48 {dimension_numbers = #tpu.dot_dimension_numbers<[1], [0], [0], [1], [0, 0, 1, 1], [], []>} : vector<16x16xbf16>, vector<16x32xbf16>, vector<16x32xf32> -> vector<16x32xf32>
    %88 = arith.addf %38, %87 : vector<16x32xf32>
    %c0_49 = arith.constant 0 : index
    %c0_50 = arith.constant 0 : index
    %c1_51 = arith.constant 1 : index
    %c0_52 = arith.constant 0 : index
    %c0_53 = arith.constant 0 : index
    %89 = vector.load %arg2[%c0_49, %c0_50, %c1_51, %c0_52, %c0_53] : memref<2x3x2x32x16xbf16, #tpu.memory_space<vmem>>, vector<1x1x1x32x16xbf16>
    %90 = vector.shape_cast %89 : vector<1x1x1x32x16xbf16> to vector<32x16xbf16>
    %cst_54 = arith.constant dense<0.000000e+00> : vector<16x16xf32>
    %91 = tpu.matmul %37, %90, %cst_54 {dimension_numbers = #tpu.dot_dimension_numbers<[1], [0], [0], [1], [0, 0, 1, 1], [], []>} : vector<16x32xbf16>, vector<32x16xbf16>, vector<16x16xf32> -> vector<16x16xf32>
    %c0_55 = arith.constant 0 : index
    %c2_56 = arith.constant 2 : index
    %c16 = arith.constant 16 : index
    %92 = vector.load %arg6[%c0_55, %c2_56, %c16] : memref<3x8x32xf32, #tpu.memory_space<vmem>>, vector<1x1x16xf32>
    %93 = vector.shape_cast %92 : vector<1x1x16xf32> to vector<1x16xf32>
    %94 = vector.broadcast %93 : vector<1x16xf32> to vector<16x16xf32>
    %95 = arith.addf %91, %94 : vector<16x16xf32>
    %c0_57 = arith.constant 0 : index
    %c1_58 = arith.constant 1 : index
    %c1_59 = arith.constant 1 : index
    %c0_60 = arith.constant 0 : index
    %c0_61 = arith.constant 0 : index
    %96 = vector.load %arg2[%c0_57, %c1_58, %c1_59, %c0_60, %c0_61] : memref<2x3x2x32x16xbf16, #tpu.memory_space<vmem>>, vector<1x1x1x32x16xbf16>
    %97 = vector.shape_cast %96 : vector<1x1x1x32x16xbf16> to vector<32x16xbf16>
    %cst_62 = arith.constant dense<0.000000e+00> : vector<16x16xf32>
    %98 = tpu.matmul %37, %97, %cst_62 {dimension_numbers = #tpu.dot_dimension_numbers<[1], [0], [0], [1], [0, 0, 1, 1], [], []>} : vector<16x32xbf16>, vector<32x16xbf16>, vector<16x16xf32> -> vector<16x16xf32>
    %c0_63 = arith.constant 0 : index
    %c3_64 = arith.constant 3 : index
    %c16_65 = arith.constant 16 : index
    %99 = vector.load %arg6[%c0_63, %c3_64, %c16_65] : memref<3x8x32xf32, #tpu.memory_space<vmem>>, vector<1x1x16xf32>
    %100 = vector.shape_cast %99 : vector<1x1x16xf32> to vector<1x16xf32>
    %101 = vector.broadcast %100 : vector<1x16xf32> to vector<16x16xf32>
    %102 = arith.addf %98, %101 : vector<16x16xf32>
    %c0_66 = arith.constant 0 : index
    %c2_67 = arith.constant 2 : index
    %c1_68 = arith.constant 1 : index
    %c0_69 = arith.constant 0 : index
    %c0_70 = arith.constant 0 : index
    %103 = vector.load %arg2[%c0_66, %c2_67, %c1_68, %c0_69, %c0_70] : memref<2x3x2x32x16xbf16, #tpu.memory_space<vmem>>, vector<1x1x1x32x16xbf16>
    %104 = vector.shape_cast %103 : vector<1x1x1x32x16xbf16> to vector<32x16xbf16>
    %cst_71 = arith.constant dense<0.000000e+00> : vector<16x16xf32>
    %105 = tpu.matmul %37, %104, %cst_71 {dimension_numbers = #tpu.dot_dimension_numbers<[1], [0], [0], [1], [0, 0, 1, 1], [], []>} : vector<16x32xbf16>, vector<32x16xbf16>, vector<16x16xf32> -> vector<16x16xf32>
    %c0_72 = arith.constant 0 : index
    %c4_73 = arith.constant 4 : index
    %c16_74 = arith.constant 16 : index
    %106 = vector.load %arg6[%c0_72, %c4_73, %c16_74] : memref<3x8x32xf32, #tpu.memory_space<vmem>>, vector<1x1x16xf32>
    %107 = vector.shape_cast %106 : vector<1x1x16xf32> to vector<1x16xf32>
    %108 = vector.broadcast %107 : vector<1x16xf32> to vector<16x16xf32>
    %109 = arith.addf %105, %108 : vector<16x16xf32>
    %110 = vector.shape_cast %95 : vector<16x16xf32> to vector<2x8x16xf32>
    %111 = arith.truncf %110 : vector<2x8x16xf32> to vector<2x8x16xbf16>
    %112 = vector.shape_cast %102 : vector<16x16xf32> to vector<2x8x16xf32>
    %113 = arith.truncf %112 : vector<2x8x16xf32> to vector<2x8x16xbf16>
    %114 = vector.shape_cast %109 : vector<16x16xf32> to vector<2x8x16xf32>
    %115 = arith.truncf %114 : vector<2x8x16xf32> to vector<2x8x16xbf16>
    "tpu.trace_start"() <{level = 10 : i32, message = "bqd,bkd->bqk"}> : () -> ()
    %cst_75 = arith.constant dense<0.000000e+00> : vector<2x8x8xf32>
    %116 = tpu.matmul %111, %113, %cst_75 {dimension_numbers = #tpu.dot_dimension_numbers<[2], [2], [1], [1], [0, 0, 0, 1, 1, 1], [0], [0]>} : vector<2x8x16xbf16>, vector<2x8x16xbf16>, vector<2x8x8xf32> -> vector<2x8x8xf32>
    "tpu.trace_stop"() : () -> ()
    %cst_76 = arith.constant 2.500000e-01 : f32
    %117 = vector.broadcast %cst_76 : f32 to vector<2x8x8xf32>
    %118 = arith.mulf %116, %117 : vector<2x8x8xf32>
    %cst_77 = arith.constant -1.000000e+09 : f32
    %119 = vector.broadcast %cst_77 : f32 to vector<2x8x8xf32>
    %120 = arith.select %9, %118, %119 : vector<2x8x8xi1>, vector<2x8x8xf32>
    %cst_78 = arith.constant dense<0xFF800000> : vector<2x8xf32>
    %121 = vector.multi_reduction <maximumf>, %120, %cst_78 [2] : vector<2x8x8xf32> to vector<2x8xf32>
    %122 = vector.shape_cast %121 : vector<2x8xf32> to vector<2x8x1xf32>
    %123 = vector.broadcast %122 : vector<2x8x1xf32> to vector<2x8x8xf32>
    %124 = arith.subf %120, %123 : vector<2x8x8xf32>
    %125 = math.exp %124 : vector<2x8x8xf32>
    %cst_79 = arith.constant dense<0.000000e+00> : vector<2x8xf32>
    %126 = vector.multi_reduction <add>, %125, %cst_79 [2] : vector<2x8x8xf32> to vector<2x8xf32>
    %127 = vector.shape_cast %126 : vector<2x8xf32> to vector<2x8x1xf32>
    %128 = tpu.reciprocal %127 {approx = true} : vector<2x8x1xf32> -> vector<2x8x1xf32>
    %129 = vector.broadcast %128 : vector<2x8x1xf32> to vector<2x8x8xf32>
    %130 = arith.mulf %125, %129 : vector<2x8x8xf32>
    %131 = arith.truncf %130 : vector<2x8x8xf32> to vector<2x8x8xbf16>
    "tpu.trace_start"() <{level = 10 : i32, message = "bqk,bkd->bqd"}> : () -> ()
    %cst_80 = arith.constant dense<0.000000e+00> : vector<2x8x16xf32>
    %132 = tpu.matmul %131, %115, %cst_80 {dimension_numbers = #tpu.dot_dimension_numbers<[2], [1], [1], [2], [0, 0, 0, 1, 1, 2], [0], [0]>} : vector<2x8x8xbf16>, vector<2x8x16xbf16>, vector<2x8x16xf32> -> vector<2x8x16xf32>
    "tpu.trace_stop"() : () -> ()
    %133 = vector.shape_cast %132 : vector<2x8x16xf32> to vector<16x16xf32>
    %134 = arith.truncf %133 : vector<16x16xf32> to vector<16x16xbf16>
    %c0_81 = arith.constant 0 : index
    %c1_82 = arith.constant 1 : index
    %c0_83 = arith.constant 0 : index
    %c0_84 = arith.constant 0 : index
    %135 = vector.load %arg3[%c0_81, %c1_82, %c0_83, %c0_84] : memref<2x2x16x32xbf16, #tpu.memory_space<vmem>>, vector<1x1x16x32xbf16>
    %136 = vector.shape_cast %135 : vector<1x1x16x32xbf16> to vector<16x32xbf16>
    %cst_85 = arith.constant dense<0.000000e+00> : vector<16x32xf32>
    %137 = tpu.matmul %134, %136, %cst_85 {dimension_numbers = #tpu.dot_dimension_numbers<[1], [0], [0], [1], [0, 0, 1, 1], [], []>} : vector<16x16xbf16>, vector<16x32xbf16>, vector<16x32xf32> -> vector<16x32xf32>
    %138 = arith.addf %88, %137 : vector<16x32xf32>
    %139 = arith.addf %10, %138 : vector<16x32xf32>
    %c0_86 = arith.constant 0 : index
    %c5 = arith.constant 5 : index
    %c0_87 = arith.constant 0 : index
    %140 = vector.load %arg6[%c0_86, %c5, %c0_87] : memref<3x8x32xf32, #tpu.memory_space<vmem>>, vector<1x1x32xf32>
    %141 = vector.shape_cast %140 : vector<1x1x32xf32> to vector<1x32xf32>
    %142 = vector.broadcast %141 : vector<1x32xf32> to vector<16x32xf32>
    %143 = arith.addf %139, %142 : vector<16x32xf32>
    %c0_88 = arith.constant 0 : index
    %c6 = arith.constant 6 : index
    %c0_89 = arith.constant 0 : index
    %144 = vector.load %arg6[%c0_88, %c6, %c0_89] : memref<3x8x32xf32, #tpu.memory_space<vmem>>, vector<1x1x32xf32>
    %145 = vector.shape_cast %144 : vector<1x1x32xf32> to vector<1x32xf32>
    %c0_90 = arith.constant 0 : index
    %c7 = arith.constant 7 : index
    %c0_91 = arith.constant 0 : index
    %146 = vector.load %arg6[%c0_90, %c7, %c0_91] : memref<3x8x32xf32, #tpu.memory_space<vmem>>, vector<1x1x32xf32>
    %147 = vector.shape_cast %146 : vector<1x1x32xf32> to vector<1x32xf32>
    %cst_92 = arith.constant dense<0.000000e+00> : vector<16xf32>
    %148 = vector.multi_reduction <add>, %143, %cst_92 [1] : vector<16x32xf32> to vector<16xf32>
    %149 = vector.shape_cast %148 : vector<16xf32> to vector<16x1xf32>
    %cst_93 = arith.constant 3.200000e+01 : f32
    %150 = vector.broadcast %cst_93 : f32 to vector<16x1xf32>
    %151 = arith.divf %149, %150 : vector<16x1xf32>
    %152 = vector.broadcast %151 : vector<16x1xf32> to vector<16x32xf32>
    %153 = arith.subf %143, %152 : vector<16x32xf32>
    %154 = arith.mulf %153, %153 : vector<16x32xf32>
    %cst_94 = arith.constant dense<0.000000e+00> : vector<16xf32>
    %155 = vector.multi_reduction <add>, %154, %cst_94 [1] : vector<16x32xf32> to vector<16xf32>
    %156 = vector.shape_cast %155 : vector<16xf32> to vector<16x1xf32>
    %cst_95 = arith.constant 3.200000e+01 : f32
    %157 = vector.broadcast %cst_95 : f32 to vector<16x1xf32>
    %158 = arith.divf %156, %157 : vector<16x1xf32>
    %159 = vector.broadcast %151 : vector<16x1xf32> to vector<16x32xf32>
    %160 = arith.subf %143, %159 : vector<16x32xf32>
    %cst_96 = arith.constant 9.99999974E-6 : f32
    %161 = vector.broadcast %cst_96 : f32 to vector<16x1xf32>
    %162 = arith.addf %158, %161 : vector<16x1xf32>
    %163 = math.rsqrt %162 : vector<16x1xf32>
    %164 = vector.broadcast %163 : vector<16x1xf32> to vector<16x32xf32>
    %165 = arith.mulf %160, %164 : vector<16x32xf32>
    %166 = vector.broadcast %145 : vector<1x32xf32> to vector<16x32xf32>
    %167 = arith.mulf %165, %166 : vector<16x32xf32>
    %168 = vector.broadcast %147 : vector<1x32xf32> to vector<16x32xf32>
    %169 = arith.addf %167, %168 : vector<16x32xf32>
    %170 = arith.truncf %169 : vector<16x32xf32> to vector<16x32xbf16>
    %c0_97 = arith.constant 0 : index
    %c0_98 = arith.constant 0 : index
    %c0_99 = arith.constant 0 : index
    %171 = vector.load %arg4[%c0_97, %c0_98, %c0_99] : memref<2x32x128xbf16, #tpu.memory_space<vmem>>, vector<1x32x128xbf16>
    %172 = vector.shape_cast %171 : vector<1x32x128xbf16> to vector<32x128xbf16>
    %cst_100 = arith.constant dense<0.000000e+00> : vector<16x128xf32>
    %173 = tpu.matmul %170, %172, %cst_100 {dimension_numbers = #tpu.dot_dimension_numbers<[1], [0], [0], [1], [0, 0, 1, 1], [], []>} : vector<16x32xbf16>, vector<32x128xbf16>, vector<16x128xf32> -> vector<16x128xf32>
    %c0_101 = arith.constant 0 : index
    %c0_102 = arith.constant 0 : index
    %c0_103 = arith.constant 0 : index
    %174 = vector.load %arg7[%c0_101, %c0_102, %c0_103] : memref<2x2x128xf32, #tpu.memory_space<vmem>>, vector<1x1x128xf32>
    %175 = vector.shape_cast %174 : vector<1x1x128xf32> to vector<1x128xf32>
    %176 = vector.broadcast %175 : vector<1x128xf32> to vector<16x128xf32>
    %177 = arith.addf %173, %176 : vector<16x128xf32>
    %cst_104 = arith.constant 5.000000e-01 : f32
    %178 = vector.broadcast %cst_104 : f32 to vector<16x128xf32>
    %179 = arith.mulf %178, %177 : vector<16x128xf32>
    %cst_105 = arith.constant 4.471500e-02 : f32
    %180 = vector.broadcast %cst_105 : f32 to vector<16x128xf32>
    %181 = arith.mulf %180, %177 : vector<16x128xf32>
    %182 = arith.mulf %181, %177 : vector<16x128xf32>
    %183 = arith.mulf %182, %177 : vector<16x128xf32>
    %184 = arith.addf %177, %183 : vector<16x128xf32>
    %cst_106 = arith.constant 0.797884583 : f32
    %185 = vector.broadcast %cst_106 : f32 to vector<16x128xf32>
    %186 = arith.mulf %185, %184 : vector<16x128xf32>
    %187 = math.tanh %186 : vector<16x128xf32>
    %cst_107 = arith.constant 1.000000e+00 : f32
    %188 = vector.broadcast %cst_107 : f32 to vector<16x128xf32>
    %189 = arith.addf %188, %187 : vector<16x128xf32>
    %190 = arith.mulf %179, %189 : vector<16x128xf32>
    %191 = arith.truncf %190 : vector<16x128xf32> to vector<16x128xbf16>
    %c0_108 = arith.constant 0 : index
    %c0_109 = arith.constant 0 : index
    %c0_110 = arith.constant 0 : index
    %192 = vector.load %arg5[%c0_108, %c0_109, %c0_110] : memref<2x128x32xbf16, #tpu.memory_space<vmem>>, vector<1x128x32xbf16>
    %193 = vector.shape_cast %192 : vector<1x128x32xbf16> to vector<128x32xbf16>
    %cst_111 = arith.constant dense<0.000000e+00> : vector<16x32xf32>
    %194 = tpu.matmul %191, %193, %cst_111 {dimension_numbers = #tpu.dot_dimension_numbers<[1], [0], [0], [1], [0, 0, 1, 1], [], []>} : vector<16x128xbf16>, vector<128x32xbf16>, vector<16x32xf32> -> vector<16x32xf32>
    %c0_112 = arith.constant 0 : index
    %c1_113 = arith.constant 1 : index
    %c0_114 = arith.constant 0 : index
    %195 = vector.load %arg7[%c0_112, %c1_113, %c0_114] : memref<2x2x128xf32, #tpu.memory_space<vmem>>, vector<1x1x32xf32>
    %196 = vector.shape_cast %195 : vector<1x1x32xf32> to vector<1x32xf32>
    %197 = vector.broadcast %196 : vector<1x32xf32> to vector<16x32xf32>
    %198 = arith.addf %194, %197 : vector<16x32xf32>
    %199 = arith.addf %143, %198 : vector<16x32xf32>
    %c1_115 = arith.constant 1 : index
    %c0_116 = arith.constant 0 : index
    %c0_117 = arith.constant 0 : index
    %200 = vector.load %arg6[%c1_115, %c0_116, %c0_117] : memref<3x8x32xf32, #tpu.memory_space<vmem>>, vector<1x1x32xf32>
    %201 = vector.shape_cast %200 : vector<1x1x32xf32> to vector<1x32xf32>
    %c1_118 = arith.constant 1 : index
    %c1_119 = arith.constant 1 : index
    %c0_120 = arith.constant 0 : index
    %202 = vector.load %arg6[%c1_118, %c1_119, %c0_120] : memref<3x8x32xf32, #tpu.memory_space<vmem>>, vector<1x1x32xf32>
    %203 = vector.shape_cast %202 : vector<1x1x32xf32> to vector<1x32xf32>
    %cst_121 = arith.constant dense<0.000000e+00> : vector<16xf32>
    %204 = vector.multi_reduction <add>, %199, %cst_121 [1] : vector<16x32xf32> to vector<16xf32>
    %205 = vector.shape_cast %204 : vector<16xf32> to vector<16x1xf32>
    %cst_122 = arith.constant 3.200000e+01 : f32
    %206 = vector.broadcast %cst_122 : f32 to vector<16x1xf32>
    %207 = arith.divf %205, %206 : vector<16x1xf32>
    %208 = vector.broadcast %207 : vector<16x1xf32> to vector<16x32xf32>
    %209 = arith.subf %199, %208 : vector<16x32xf32>
    %210 = arith.mulf %209, %209 : vector<16x32xf32>
    %cst_123 = arith.constant dense<0.000000e+00> : vector<16xf32>
    %211 = vector.multi_reduction <add>, %210, %cst_123 [1] : vector<16x32xf32> to vector<16xf32>
    %212 = vector.shape_cast %211 : vector<16xf32> to vector<16x1xf32>
    %cst_124 = arith.constant 3.200000e+01 : f32
    %213 = vector.broadcast %cst_124 : f32 to vector<16x1xf32>
    %214 = arith.divf %212, %213 : vector<16x1xf32>
    %215 = vector.broadcast %207 : vector<16x1xf32> to vector<16x32xf32>
    %216 = arith.subf %199, %215 : vector<16x32xf32>
    %cst_125 = arith.constant 9.99999974E-6 : f32
    %217 = vector.broadcast %cst_125 : f32 to vector<16x1xf32>
    %218 = arith.addf %214, %217 : vector<16x1xf32>
    %219 = math.rsqrt %218 : vector<16x1xf32>
    %220 = vector.broadcast %219 : vector<16x1xf32> to vector<16x32xf32>
    %221 = arith.mulf %216, %220 : vector<16x32xf32>
    %222 = vector.broadcast %201 : vector<1x32xf32> to vector<16x32xf32>
    %223 = arith.mulf %221, %222 : vector<16x32xf32>
    %224 = vector.broadcast %203 : vector<1x32xf32> to vector<16x32xf32>
    %225 = arith.addf %223, %224 : vector<16x32xf32>
    %226 = arith.truncf %225 : vector<16x32xf32> to vector<16x32xbf16>
    %cst_126 = arith.constant 0.000000e+00 : f32
    %227 = vector.broadcast %cst_126 : f32 to vector<16x32xf32>
    %c1_127 = arith.constant 1 : index
    %c0_128 = arith.constant 0 : index
    %c0_129 = arith.constant 0 : index
    %c0_130 = arith.constant 0 : index
    %c0_131 = arith.constant 0 : index
    %228 = vector.load %arg2[%c1_127, %c0_128, %c0_129, %c0_130, %c0_131] : memref<2x3x2x32x16xbf16, #tpu.memory_space<vmem>>, vector<1x1x1x32x16xbf16>
    %229 = vector.shape_cast %228 : vector<1x1x1x32x16xbf16> to vector<32x16xbf16>
    %cst_132 = arith.constant dense<0.000000e+00> : vector<16x16xf32>
    %230 = tpu.matmul %226, %229, %cst_132 {dimension_numbers = #tpu.dot_dimension_numbers<[1], [0], [0], [1], [0, 0, 1, 1], [], []>} : vector<16x32xbf16>, vector<32x16xbf16>, vector<16x16xf32> -> vector<16x16xf32>
    %c1_133 = arith.constant 1 : index
    %c2_134 = arith.constant 2 : index
    %c0_135 = arith.constant 0 : index
    %231 = vector.load %arg6[%c1_133, %c2_134, %c0_135] : memref<3x8x32xf32, #tpu.memory_space<vmem>>, vector<1x1x16xf32>
    %232 = vector.shape_cast %231 : vector<1x1x16xf32> to vector<1x16xf32>
    %233 = vector.broadcast %232 : vector<1x16xf32> to vector<16x16xf32>
    %234 = arith.addf %230, %233 : vector<16x16xf32>
    %c1_136 = arith.constant 1 : index
    %c1_137 = arith.constant 1 : index
    %c0_138 = arith.constant 0 : index
    %c0_139 = arith.constant 0 : index
    %c0_140 = arith.constant 0 : index
    %235 = vector.load %arg2[%c1_136, %c1_137, %c0_138, %c0_139, %c0_140] : memref<2x3x2x32x16xbf16, #tpu.memory_space<vmem>>, vector<1x1x1x32x16xbf16>
    %236 = vector.shape_cast %235 : vector<1x1x1x32x16xbf16> to vector<32x16xbf16>
    %cst_141 = arith.constant dense<0.000000e+00> : vector<16x16xf32>
    %237 = tpu.matmul %226, %236, %cst_141 {dimension_numbers = #tpu.dot_dimension_numbers<[1], [0], [0], [1], [0, 0, 1, 1], [], []>} : vector<16x32xbf16>, vector<32x16xbf16>, vector<16x16xf32> -> vector<16x16xf32>
    %c1_142 = arith.constant 1 : index
    %c3_143 = arith.constant 3 : index
    %c0_144 = arith.constant 0 : index
    %238 = vector.load %arg6[%c1_142, %c3_143, %c0_144] : memref<3x8x32xf32, #tpu.memory_space<vmem>>, vector<1x1x16xf32>
    %239 = vector.shape_cast %238 : vector<1x1x16xf32> to vector<1x16xf32>
    %240 = vector.broadcast %239 : vector<1x16xf32> to vector<16x16xf32>
    %241 = arith.addf %237, %240 : vector<16x16xf32>
    %c1_145 = arith.constant 1 : index
    %c2_146 = arith.constant 2 : index
    %c0_147 = arith.constant 0 : index
    %c0_148 = arith.constant 0 : index
    %c0_149 = arith.constant 0 : index
    %242 = vector.load %arg2[%c1_145, %c2_146, %c0_147, %c0_148, %c0_149] : memref<2x3x2x32x16xbf16, #tpu.memory_space<vmem>>, vector<1x1x1x32x16xbf16>
    %243 = vector.shape_cast %242 : vector<1x1x1x32x16xbf16> to vector<32x16xbf16>
    %cst_150 = arith.constant dense<0.000000e+00> : vector<16x16xf32>
    %244 = tpu.matmul %226, %243, %cst_150 {dimension_numbers = #tpu.dot_dimension_numbers<[1], [0], [0], [1], [0, 0, 1, 1], [], []>} : vector<16x32xbf16>, vector<32x16xbf16>, vector<16x16xf32> -> vector<16x16xf32>
    %c1_151 = arith.constant 1 : index
    %c4_152 = arith.constant 4 : index
    %c0_153 = arith.constant 0 : index
    %245 = vector.load %arg6[%c1_151, %c4_152, %c0_153] : memref<3x8x32xf32, #tpu.memory_space<vmem>>, vector<1x1x16xf32>
    %246 = vector.shape_cast %245 : vector<1x1x16xf32> to vector<1x16xf32>
    %247 = vector.broadcast %246 : vector<1x16xf32> to vector<16x16xf32>
    %248 = arith.addf %244, %247 : vector<16x16xf32>
    %249 = vector.shape_cast %234 : vector<16x16xf32> to vector<2x8x16xf32>
    %250 = arith.truncf %249 : vector<2x8x16xf32> to vector<2x8x16xbf16>
    %251 = vector.shape_cast %241 : vector<16x16xf32> to vector<2x8x16xf32>
    %252 = arith.truncf %251 : vector<2x8x16xf32> to vector<2x8x16xbf16>
    %253 = vector.shape_cast %248 : vector<16x16xf32> to vector<2x8x16xf32>
    %254 = arith.truncf %253 : vector<2x8x16xf32> to vector<2x8x16xbf16>
    "tpu.trace_start"() <{level = 10 : i32, message = "bqd,bkd->bqk"}> : () -> ()
    %cst_154 = arith.constant dense<0.000000e+00> : vector<2x8x8xf32>
    %255 = tpu.matmul %250, %252, %cst_154 {dimension_numbers = #tpu.dot_dimension_numbers<[2], [2], [1], [1], [0, 0, 0, 1, 1, 1], [0], [0]>} : vector<2x8x16xbf16>, vector<2x8x16xbf16>, vector<2x8x8xf32> -> vector<2x8x8xf32>
    "tpu.trace_stop"() : () -> ()
    %cst_155 = arith.constant 2.500000e-01 : f32
    %256 = vector.broadcast %cst_155 : f32 to vector<2x8x8xf32>
    %257 = arith.mulf %255, %256 : vector<2x8x8xf32>
    %cst_156 = arith.constant -1.000000e+09 : f32
    %258 = vector.broadcast %cst_156 : f32 to vector<2x8x8xf32>
    %259 = arith.select %9, %257, %258 : vector<2x8x8xi1>, vector<2x8x8xf32>
    %cst_157 = arith.constant dense<0xFF800000> : vector<2x8xf32>
    %260 = vector.multi_reduction <maximumf>, %259, %cst_157 [2] : vector<2x8x8xf32> to vector<2x8xf32>
    %261 = vector.shape_cast %260 : vector<2x8xf32> to vector<2x8x1xf32>
    %262 = vector.broadcast %261 : vector<2x8x1xf32> to vector<2x8x8xf32>
    %263 = arith.subf %259, %262 : vector<2x8x8xf32>
    %264 = math.exp %263 : vector<2x8x8xf32>
    %cst_158 = arith.constant dense<0.000000e+00> : vector<2x8xf32>
    %265 = vector.multi_reduction <add>, %264, %cst_158 [2] : vector<2x8x8xf32> to vector<2x8xf32>
    %266 = vector.shape_cast %265 : vector<2x8xf32> to vector<2x8x1xf32>
    %267 = tpu.reciprocal %266 {approx = true} : vector<2x8x1xf32> -> vector<2x8x1xf32>
    %268 = vector.broadcast %267 : vector<2x8x1xf32> to vector<2x8x8xf32>
    %269 = arith.mulf %264, %268 : vector<2x8x8xf32>
    %270 = arith.truncf %269 : vector<2x8x8xf32> to vector<2x8x8xbf16>
    "tpu.trace_start"() <{level = 10 : i32, message = "bqk,bkd->bqd"}> : () -> ()
    %cst_159 = arith.constant dense<0.000000e+00> : vector<2x8x16xf32>
    %271 = tpu.matmul %270, %254, %cst_159 {dimension_numbers = #tpu.dot_dimension_numbers<[2], [1], [1], [2], [0, 0, 0, 1, 1, 2], [0], [0]>} : vector<2x8x8xbf16>, vector<2x8x16xbf16>, vector<2x8x16xf32> -> vector<2x8x16xf32>
    "tpu.trace_stop"() : () -> ()
    %272 = vector.shape_cast %271 : vector<2x8x16xf32> to vector<16x16xf32>
    %273 = arith.truncf %272 : vector<16x16xf32> to vector<16x16xbf16>
    %c1_160 = arith.constant 1 : index
    %c0_161 = arith.constant 0 : index
    %c0_162 = arith.constant 0 : index
    %c0_163 = arith.constant 0 : index
    %274 = vector.load %arg3[%c1_160, %c0_161, %c0_162, %c0_163] : memref<2x2x16x32xbf16, #tpu.memory_space<vmem>>, vector<1x1x16x32xbf16>
    %275 = vector.shape_cast %274 : vector<1x1x16x32xbf16> to vector<16x32xbf16>
    %cst_164 = arith.constant dense<0.000000e+00> : vector<16x32xf32>
    %276 = tpu.matmul %273, %275, %cst_164 {dimension_numbers = #tpu.dot_dimension_numbers<[1], [0], [0], [1], [0, 0, 1, 1], [], []>} : vector<16x16xbf16>, vector<16x32xbf16>, vector<16x32xf32> -> vector<16x32xf32>
    %277 = arith.addf %227, %276 : vector<16x32xf32>
    %c1_165 = arith.constant 1 : index
    %c0_166 = arith.constant 0 : index
    %c1_167 = arith.constant 1 : index
    %c0_168 = arith.constant 0 : index
    %c0_169 = arith.constant 0 : index
    %278 = vector.load %arg2[%c1_165, %c0_166, %c1_167, %c0_168, %c0_169] : memref<2x3x2x32x16xbf16, #tpu.memory_space<vmem>>, vector<1x1x1x32x16xbf16>
    %279 = vector.shape_cast %278 : vector<1x1x1x32x16xbf16> to vector<32x16xbf16>
    %cst_170 = arith.constant dense<0.000000e+00> : vector<16x16xf32>
    %280 = tpu.matmul %226, %279, %cst_170 {dimension_numbers = #tpu.dot_dimension_numbers<[1], [0], [0], [1], [0, 0, 1, 1], [], []>} : vector<16x32xbf16>, vector<32x16xbf16>, vector<16x16xf32> -> vector<16x16xf32>
    %c1_171 = arith.constant 1 : index
    %c2_172 = arith.constant 2 : index
    %c16_173 = arith.constant 16 : index
    %281 = vector.load %arg6[%c1_171, %c2_172, %c16_173] : memref<3x8x32xf32, #tpu.memory_space<vmem>>, vector<1x1x16xf32>
    %282 = vector.shape_cast %281 : vector<1x1x16xf32> to vector<1x16xf32>
    %283 = vector.broadcast %282 : vector<1x16xf32> to vector<16x16xf32>
    %284 = arith.addf %280, %283 : vector<16x16xf32>
    %c1_174 = arith.constant 1 : index
    %c1_175 = arith.constant 1 : index
    %c1_176 = arith.constant 1 : index
    %c0_177 = arith.constant 0 : index
    %c0_178 = arith.constant 0 : index
    %285 = vector.load %arg2[%c1_174, %c1_175, %c1_176, %c0_177, %c0_178] : memref<2x3x2x32x16xbf16, #tpu.memory_space<vmem>>, vector<1x1x1x32x16xbf16>
    %286 = vector.shape_cast %285 : vector<1x1x1x32x16xbf16> to vector<32x16xbf16>
    %cst_179 = arith.constant dense<0.000000e+00> : vector<16x16xf32>
    %287 = tpu.matmul %226, %286, %cst_179 {dimension_numbers = #tpu.dot_dimension_numbers<[1], [0], [0], [1], [0, 0, 1, 1], [], []>} : vector<16x32xbf16>, vector<32x16xbf16>, vector<16x16xf32> -> vector<16x16xf32>
    %c1_180 = arith.constant 1 : index
    %c3_181 = arith.constant 3 : index
    %c16_182 = arith.constant 16 : index
    %288 = vector.load %arg6[%c1_180, %c3_181, %c16_182] : memref<3x8x32xf32, #tpu.memory_space<vmem>>, vector<1x1x16xf32>
    %289 = vector.shape_cast %288 : vector<1x1x16xf32> to vector<1x16xf32>
    %290 = vector.broadcast %289 : vector<1x16xf32> to vector<16x16xf32>
    %291 = arith.addf %287, %290 : vector<16x16xf32>
    %c1_183 = arith.constant 1 : index
    %c2_184 = arith.constant 2 : index
    %c1_185 = arith.constant 1 : index
    %c0_186 = arith.constant 0 : index
    %c0_187 = arith.constant 0 : index
    %292 = vector.load %arg2[%c1_183, %c2_184, %c1_185, %c0_186, %c0_187] : memref<2x3x2x32x16xbf16, #tpu.memory_space<vmem>>, vector<1x1x1x32x16xbf16>
    %293 = vector.shape_cast %292 : vector<1x1x1x32x16xbf16> to vector<32x16xbf16>
    %cst_188 = arith.constant dense<0.000000e+00> : vector<16x16xf32>
    %294 = tpu.matmul %226, %293, %cst_188 {dimension_numbers = #tpu.dot_dimension_numbers<[1], [0], [0], [1], [0, 0, 1, 1], [], []>} : vector<16x32xbf16>, vector<32x16xbf16>, vector<16x16xf32> -> vector<16x16xf32>
    %c1_189 = arith.constant 1 : index
    %c4_190 = arith.constant 4 : index
    %c16_191 = arith.constant 16 : index
    %295 = vector.load %arg6[%c1_189, %c4_190, %c16_191] : memref<3x8x32xf32, #tpu.memory_space<vmem>>, vector<1x1x16xf32>
    %296 = vector.shape_cast %295 : vector<1x1x16xf32> to vector<1x16xf32>
    %297 = vector.broadcast %296 : vector<1x16xf32> to vector<16x16xf32>
    %298 = arith.addf %294, %297 : vector<16x16xf32>
    %299 = vector.shape_cast %284 : vector<16x16xf32> to vector<2x8x16xf32>
    %300 = arith.truncf %299 : vector<2x8x16xf32> to vector<2x8x16xbf16>
    %301 = vector.shape_cast %291 : vector<16x16xf32> to vector<2x8x16xf32>
    %302 = arith.truncf %301 : vector<2x8x16xf32> to vector<2x8x16xbf16>
    %303 = vector.shape_cast %298 : vector<16x16xf32> to vector<2x8x16xf32>
    %304 = arith.truncf %303 : vector<2x8x16xf32> to vector<2x8x16xbf16>
    "tpu.trace_start"() <{level = 10 : i32, message = "bqd,bkd->bqk"}> : () -> ()
    %cst_192 = arith.constant dense<0.000000e+00> : vector<2x8x8xf32>
    %305 = tpu.matmul %300, %302, %cst_192 {dimension_numbers = #tpu.dot_dimension_numbers<[2], [2], [1], [1], [0, 0, 0, 1, 1, 1], [0], [0]>} : vector<2x8x16xbf16>, vector<2x8x16xbf16>, vector<2x8x8xf32> -> vector<2x8x8xf32>
    "tpu.trace_stop"() : () -> ()
    %cst_193 = arith.constant 2.500000e-01 : f32
    %306 = vector.broadcast %cst_193 : f32 to vector<2x8x8xf32>
    %307 = arith.mulf %305, %306 : vector<2x8x8xf32>
    %cst_194 = arith.constant -1.000000e+09 : f32
    %308 = vector.broadcast %cst_194 : f32 to vector<2x8x8xf32>
    %309 = arith.select %9, %307, %308 : vector<2x8x8xi1>, vector<2x8x8xf32>
    %cst_195 = arith.constant dense<0xFF800000> : vector<2x8xf32>
    %310 = vector.multi_reduction <maximumf>, %309, %cst_195 [2] : vector<2x8x8xf32> to vector<2x8xf32>
    %311 = vector.shape_cast %310 : vector<2x8xf32> to vector<2x8x1xf32>
    %312 = vector.broadcast %311 : vector<2x8x1xf32> to vector<2x8x8xf32>
    %313 = arith.subf %309, %312 : vector<2x8x8xf32>
    %314 = math.exp %313 : vector<2x8x8xf32>
    %cst_196 = arith.constant dense<0.000000e+00> : vector<2x8xf32>
    %315 = vector.multi_reduction <add>, %314, %cst_196 [2] : vector<2x8x8xf32> to vector<2x8xf32>
    %316 = vector.shape_cast %315 : vector<2x8xf32> to vector<2x8x1xf32>
    %317 = tpu.reciprocal %316 {approx = true} : vector<2x8x1xf32> -> vector<2x8x1xf32>
    %318 = vector.broadcast %317 : vector<2x8x1xf32> to vector<2x8x8xf32>
    %319 = arith.mulf %314, %318 : vector<2x8x8xf32>
    %320 = arith.truncf %319 : vector<2x8x8xf32> to vector<2x8x8xbf16>
    "tpu.trace_start"() <{level = 10 : i32, message = "bqk,bkd->bqd"}> : () -> ()
    %cst_197 = arith.constant dense<0.000000e+00> : vector<2x8x16xf32>
    %321 = tpu.matmul %320, %304, %cst_197 {dimension_numbers = #tpu.dot_dimension_numbers<[2], [1], [1], [2], [0, 0, 0, 1, 1, 2], [0], [0]>} : vector<2x8x8xbf16>, vector<2x8x16xbf16>, vector<2x8x16xf32> -> vector<2x8x16xf32>
    "tpu.trace_stop"() : () -> ()
    %322 = vector.shape_cast %321 : vector<2x8x16xf32> to vector<16x16xf32>
    %323 = arith.truncf %322 : vector<16x16xf32> to vector<16x16xbf16>
    %c1_198 = arith.constant 1 : index
    %c1_199 = arith.constant 1 : index
    %c0_200 = arith.constant 0 : index
    %c0_201 = arith.constant 0 : index
    %324 = vector.load %arg3[%c1_198, %c1_199, %c0_200, %c0_201] : memref<2x2x16x32xbf16, #tpu.memory_space<vmem>>, vector<1x1x16x32xbf16>
    %325 = vector.shape_cast %324 : vector<1x1x16x32xbf16> to vector<16x32xbf16>
    %cst_202 = arith.constant dense<0.000000e+00> : vector<16x32xf32>
    %326 = tpu.matmul %323, %325, %cst_202 {dimension_numbers = #tpu.dot_dimension_numbers<[1], [0], [0], [1], [0, 0, 1, 1], [], []>} : vector<16x16xbf16>, vector<16x32xbf16>, vector<16x32xf32> -> vector<16x32xf32>
    %327 = arith.addf %277, %326 : vector<16x32xf32>
    %328 = arith.addf %199, %327 : vector<16x32xf32>
    %c1_203 = arith.constant 1 : index
    %c5_204 = arith.constant 5 : index
    %c0_205 = arith.constant 0 : index
    %329 = vector.load %arg6[%c1_203, %c5_204, %c0_205] : memref<3x8x32xf32, #tpu.memory_space<vmem>>, vector<1x1x32xf32>
    %330 = vector.shape_cast %329 : vector<1x1x32xf32> to vector<1x32xf32>
    %331 = vector.broadcast %330 : vector<1x32xf32> to vector<16x32xf32>
    %332 = arith.addf %328, %331 : vector<16x32xf32>
    %c1_206 = arith.constant 1 : index
    %c6_207 = arith.constant 6 : index
    %c0_208 = arith.constant 0 : index
    %333 = vector.load %arg6[%c1_206, %c6_207, %c0_208] : memref<3x8x32xf32, #tpu.memory_space<vmem>>, vector<1x1x32xf32>
    %334 = vector.shape_cast %333 : vector<1x1x32xf32> to vector<1x32xf32>
    %c1_209 = arith.constant 1 : index
    %c7_210 = arith.constant 7 : index
    %c0_211 = arith.constant 0 : index
    %335 = vector.load %arg6[%c1_209, %c7_210, %c0_211] : memref<3x8x32xf32, #tpu.memory_space<vmem>>, vector<1x1x32xf32>
    %336 = vector.shape_cast %335 : vector<1x1x32xf32> to vector<1x32xf32>
    %cst_212 = arith.constant dense<0.000000e+00> : vector<16xf32>
    %337 = vector.multi_reduction <add>, %332, %cst_212 [1] : vector<16x32xf32> to vector<16xf32>
    %338 = vector.shape_cast %337 : vector<16xf32> to vector<16x1xf32>
    %cst_213 = arith.constant 3.200000e+01 : f32
    %339 = vector.broadcast %cst_213 : f32 to vector<16x1xf32>
    %340 = arith.divf %338, %339 : vector<16x1xf32>
    %341 = vector.broadcast %340 : vector<16x1xf32> to vector<16x32xf32>
    %342 = arith.subf %332, %341 : vector<16x32xf32>
    %343 = arith.mulf %342, %342 : vector<16x32xf32>
    %cst_214 = arith.constant dense<0.000000e+00> : vector<16xf32>
    %344 = vector.multi_reduction <add>, %343, %cst_214 [1] : vector<16x32xf32> to vector<16xf32>
    %345 = vector.shape_cast %344 : vector<16xf32> to vector<16x1xf32>
    %cst_215 = arith.constant 3.200000e+01 : f32
    %346 = vector.broadcast %cst_215 : f32 to vector<16x1xf32>
    %347 = arith.divf %345, %346 : vector<16x1xf32>
    %348 = vector.broadcast %340 : vector<16x1xf32> to vector<16x32xf32>
    %349 = arith.subf %332, %348 : vector<16x32xf32>
    %cst_216 = arith.constant 9.99999974E-6 : f32
    %350 = vector.broadcast %cst_216 : f32 to vector<16x1xf32>
    %351 = arith.addf %347, %350 : vector<16x1xf32>
    %352 = math.rsqrt %351 : vector<16x1xf32>
    %353 = vector.broadcast %352 : vector<16x1xf32> to vector<16x32xf32>
    %354 = arith.mulf %349, %353 : vector<16x32xf32>
    %355 = vector.broadcast %334 : vector<1x32xf32> to vector<16x32xf32>
    %356 = arith.mulf %354, %355 : vector<16x32xf32>
    %357 = vector.broadcast %336 : vector<1x32xf32> to vector<16x32xf32>
    %358 = arith.addf %356, %357 : vector<16x32xf32>
    %359 = arith.truncf %358 : vector<16x32xf32> to vector<16x32xbf16>
    %c1_217 = arith.constant 1 : index
    %c0_218 = arith.constant 0 : index
    %c0_219 = arith.constant 0 : index
    %360 = vector.load %arg4[%c1_217, %c0_218, %c0_219] : memref<2x32x128xbf16, #tpu.memory_space<vmem>>, vector<1x32x128xbf16>
    %361 = vector.shape_cast %360 : vector<1x32x128xbf16> to vector<32x128xbf16>
    %cst_220 = arith.constant dense<0.000000e+00> : vector<16x128xf32>
    %362 = tpu.matmul %359, %361, %cst_220 {dimension_numbers = #tpu.dot_dimension_numbers<[1], [0], [0], [1], [0, 0, 1, 1], [], []>} : vector<16x32xbf16>, vector<32x128xbf16>, vector<16x128xf32> -> vector<16x128xf32>
    %c1_221 = arith.constant 1 : index
    %c0_222 = arith.constant 0 : index
    %c0_223 = arith.constant 0 : index
    %363 = vector.load %arg7[%c1_221, %c0_222, %c0_223] : memref<2x2x128xf32, #tpu.memory_space<vmem>>, vector<1x1x128xf32>
    %364 = vector.shape_cast %363 : vector<1x1x128xf32> to vector<1x128xf32>
    %365 = vector.broadcast %364 : vector<1x128xf32> to vector<16x128xf32>
    %366 = arith.addf %362, %365 : vector<16x128xf32>
    %cst_224 = arith.constant 5.000000e-01 : f32
    %367 = vector.broadcast %cst_224 : f32 to vector<16x128xf32>
    %368 = arith.mulf %367, %366 : vector<16x128xf32>
    %cst_225 = arith.constant 4.471500e-02 : f32
    %369 = vector.broadcast %cst_225 : f32 to vector<16x128xf32>
    %370 = arith.mulf %369, %366 : vector<16x128xf32>
    %371 = arith.mulf %370, %366 : vector<16x128xf32>
    %372 = arith.mulf %371, %366 : vector<16x128xf32>
    %373 = arith.addf %366, %372 : vector<16x128xf32>
    %cst_226 = arith.constant 0.797884583 : f32
    %374 = vector.broadcast %cst_226 : f32 to vector<16x128xf32>
    %375 = arith.mulf %374, %373 : vector<16x128xf32>
    %376 = math.tanh %375 : vector<16x128xf32>
    %cst_227 = arith.constant 1.000000e+00 : f32
    %377 = vector.broadcast %cst_227 : f32 to vector<16x128xf32>
    %378 = arith.addf %377, %376 : vector<16x128xf32>
    %379 = arith.mulf %368, %378 : vector<16x128xf32>
    %380 = arith.truncf %379 : vector<16x128xf32> to vector<16x128xbf16>
    %c1_228 = arith.constant 1 : index
    %c0_229 = arith.constant 0 : index
    %c0_230 = arith.constant 0 : index
    %381 = vector.load %arg5[%c1_228, %c0_229, %c0_230] : memref<2x128x32xbf16, #tpu.memory_space<vmem>>, vector<1x128x32xbf16>
    %382 = vector.shape_cast %381 : vector<1x128x32xbf16> to vector<128x32xbf16>
    %cst_231 = arith.constant dense<0.000000e+00> : vector<16x32xf32>
    %383 = tpu.matmul %380, %382, %cst_231 {dimension_numbers = #tpu.dot_dimension_numbers<[1], [0], [0], [1], [0, 0, 1, 1], [], []>} : vector<16x128xbf16>, vector<128x32xbf16>, vector<16x32xf32> -> vector<16x32xf32>
    %c1_232 = arith.constant 1 : index
    %c1_233 = arith.constant 1 : index
    %c0_234 = arith.constant 0 : index
    %384 = vector.load %arg7[%c1_232, %c1_233, %c0_234] : memref<2x2x128xf32, #tpu.memory_space<vmem>>, vector<1x1x32xf32>
    %385 = vector.shape_cast %384 : vector<1x1x32xf32> to vector<1x32xf32>
    %386 = vector.broadcast %385 : vector<1x32xf32> to vector<16x32xf32>
    %387 = arith.addf %383, %386 : vector<16x32xf32>
    %388 = arith.addf %332, %387 : vector<16x32xf32>
    %c2_235 = arith.constant 2 : index
    %c0_236 = arith.constant 0 : index
    %c0_237 = arith.constant 0 : index
    %389 = vector.load %arg6[%c2_235, %c0_236, %c0_237] : memref<3x8x32xf32, #tpu.memory_space<vmem>>, vector<1x1x32xf32>
    %390 = vector.shape_cast %389 : vector<1x1x32xf32> to vector<1x32xf32>
    %c2_238 = arith.constant 2 : index
    %c1_239 = arith.constant 1 : index
    %c0_240 = arith.constant 0 : index
    %391 = vector.load %arg6[%c2_238, %c1_239, %c0_240] : memref<3x8x32xf32, #tpu.memory_space<vmem>>, vector<1x1x32xf32>
    %392 = vector.shape_cast %391 : vector<1x1x32xf32> to vector<1x32xf32>
    %cst_241 = arith.constant dense<0.000000e+00> : vector<16xf32>
    %393 = vector.multi_reduction <add>, %388, %cst_241 [1] : vector<16x32xf32> to vector<16xf32>
    %394 = vector.shape_cast %393 : vector<16xf32> to vector<16x1xf32>
    %cst_242 = arith.constant 3.200000e+01 : f32
    %395 = vector.broadcast %cst_242 : f32 to vector<16x1xf32>
    %396 = arith.divf %394, %395 : vector<16x1xf32>
    %397 = vector.broadcast %396 : vector<16x1xf32> to vector<16x32xf32>
    %398 = arith.subf %388, %397 : vector<16x32xf32>
    %399 = arith.mulf %398, %398 : vector<16x32xf32>
    %cst_243 = arith.constant dense<0.000000e+00> : vector<16xf32>
    %400 = vector.multi_reduction <add>, %399, %cst_243 [1] : vector<16x32xf32> to vector<16xf32>
    %401 = vector.shape_cast %400 : vector<16xf32> to vector<16x1xf32>
    %cst_244 = arith.constant 3.200000e+01 : f32
    %402 = vector.broadcast %cst_244 : f32 to vector<16x1xf32>
    %403 = arith.divf %401, %402 : vector<16x1xf32>
    %404 = vector.broadcast %396 : vector<16x1xf32> to vector<16x32xf32>
    %405 = arith.subf %388, %404 : vector<16x32xf32>
    %cst_245 = arith.constant 9.99999974E-6 : f32
    %406 = vector.broadcast %cst_245 : f32 to vector<16x1xf32>
    %407 = arith.addf %403, %406 : vector<16x1xf32>
    %408 = math.rsqrt %407 : vector<16x1xf32>
    %409 = vector.broadcast %408 : vector<16x1xf32> to vector<16x32xf32>
    %410 = arith.mulf %405, %409 : vector<16x32xf32>
    %411 = vector.broadcast %390 : vector<1x32xf32> to vector<16x32xf32>
    %412 = arith.mulf %410, %411 : vector<16x32xf32>
    %413 = vector.broadcast %392 : vector<1x32xf32> to vector<16x32xf32>
    %414 = arith.addf %412, %413 : vector<16x32xf32>
    %c0_246 = arith.constant 0 : index
    %c0_247 = arith.constant 0 : index
    %415 = vector.load %arg8[%c0_246, %c0_247] : memref<16x32xf32, #tpu.memory_space<vmem>>, vector<16x32xf32>
    tpu.vector_store %arg8[%c0_246, %c0_247], %414 {strides = array<i32>} : memref<16x32xf32, #tpu.memory_space<vmem>>, vector<16x32xf32>,
    return
  }
}

</mosaic_0001>

<bundles_post_ra>
// kernel: paraphrase_gpt_forward.1
= control target key start
LH: loop header
LB: loop body
LE: loop exit
PB: predicated region body
PF: predicated region fallthrough
CT: control target
= control target key end

     0   :  { %vm59_vm0 = vcmask 261120   ;;  %v3238_v15 = vmov 0.0   ;;  %vm3239_vm1 = vmmov 0   ;;  %vm297_vm2 = vcmask 130048   ;;  %s3868_s0 = inlined_call_operand.vmem [shape: f32[16,32], index: 0, kind: input, shape index: {}]   ;;  %s3869_s2 = inlined_call_operand.vmem [shape: bf16[2,3,2,32,16], index: 2, kind: input, shape index: {}]   ;;  %s3870_s6 = inlined_call_operand.vmem [shape: f32[3,8,32], index: 6, kind: input, shape index: {}]   ;;  %s3871_s1 = inlined_call_operand.vmem [shape: s32[2,1,8], index: 1, kind: input, shape index: {}]   ;;  %s3872_s3 = inlined_call_operand.vmem [shape: bf16[2,2,16,32], index: 3, kind: input, shape index: {}]   ;;  %s3873_s4 = inlined_call_operand.vmem [shape: bf16[2,32,128], index: 4, kind: input, shape index: {}]   ;;  %s3874_s5 = inlined_call_operand.vmem [shape: bf16[2,128,32], index: 5, kind: input, shape index: {}]   ;;  %s3875_s7 = inlined_call_operand.vmem [shape: f32[2,2,128], index: 7, kind: input, shape index: {}]   ;;  %s3876_s8 = inlined_call_operand.vmem [shape: f32[16,32], index: 8, kind: output, shape index: {}]  }
   0x1   :  { %v3290_v0 = vld [vmem:[%s3868_s0] sm:$0xff]  ;;  %v3295_v1 = vld [vmem:[%s3868_s0 + $0x8] sm:$0xff]  ;;  %2854 = vmatprep.subr.bf16.mxu1 %v3238_v15  ;;  %2884 = vmatprep.subr.bf16.mxu0 %v3238_v15  ;;  %vm422_vm3 = vcmask 1043456   ;;  %vm394_vm10 = vcmask 64512  }
   0x2   :  { %v60_v2 = vsel %vm59_vm0, %v3290_v0, 0.0  ;;  %v63_v3 = vsel %vm59_vm0, %v3295_v1, 0.0  ;;  %v3130_v14 = vld [vmem:[%s3869_s2] sm:$0xff]   ;;  %v3131_v16 = vld [vmem:[%s3869_s2 + $0x8] sm:$0xff]   ;;  %2858 = vmatprep.mubr.msk.bf16.mxu1 %vm3239_vm1, %v3238_v15  ;;  %2886 = vmatprep.mubr.msk.bf16.mxu0 %vm3239_vm1, %v3238_v15 }
   0x3   :  { %61 = vadd.xlane.f32.xlu0 %v60_v2  ;;  %2855 = vmatpush3.bf16.msra.mxu1 %v3130_v14  ;;  %v2559_v25 = vld [vmem:[%s3870_s6] ss:$0 sm:$0xff]  ;;  %v2560_v29 = vld [vmem:[%s3870_s6 + $0x1] ss:$0 sm:$0xff]  ;;  %v3133_v35 = vld [vmem:[%s3869_s2 + $0x28] sm:$0xff]  }
   0x4   :  { %2856 = vmatprep.subr.bf16.mxu1 %v3238_v15  ;;  %v3132_v33 = vld [vmem:[%s3869_s2 + $0x20] sm:$0xff]   ;;  %v3135_v37 = vld [vmem:[%s3869_s2 + $0x48] sm:$0xff]  }
   0x5   :  { %v3134_v36 = vld [vmem:[%s3869_s2 + $0x40] sm:$0xff]  }
   0x6   :  { %v3358_v42 = vld [vmem:[%s3870_s6 + $0x3] ss:$0 sm:$0xff]  ;;  %v3365_v50 = vld [vmem:[%s3870_s6 + $0x2] ss:$0 sm:$0xff]  ;;  %v3371_v53 = vld [vmem:[%s3870_s6 + $0x4] ss:$0 sm:$0xff] }
   0x7   :  { %64 = vadd.xlane.f32.xlu0 %v63_v3  ;;  %2857 = vmatpush3.bf16.msra.mxu1 %v3131_v16 }
   0x8   :  { %2862 = vmatprep.subr.bf16.mxu1 %v3238_v15 }
  0x90   :  { %v62_v4 = vpop.xlane.xlu0 %61 }
  0x91   :  { %v67_v5 = vmul.f32 0.03125, %v62_v4 }
  0x93   :  { %v69_v6 = vsub.f32 %v3290_v0, %v67_v5 }
  0x94   :  { %v65_v7 = vpop.xlane.xlu0 %64 }
  0x95   :  { %v68_v8 = vmul.f32 0.03125, %v65_v7  ;;  %v71_v9 = vmul.f32 %v69_v6, %v69_v6  ;;  %v30_v7 = vlaneseq }
  0x97   :  { %v70_v10 = vsub.f32 %v3295_v1, %v68_v8  ;;  %v73_v11 = vsel %vm59_vm0, %v71_v9, 0.0  ;;  %v35_v8 = vld [vmem:[%s3871_s1] sm:$0x1]  ;;  %v31_v9 = vshrl.u32 %v30_v7, 7  ;;  %v33_v16 = vand.u32 127, %v30_v7 }
  0x98   :  { %74 = vadd.xlane.f32.xlu1 %v73_v11  ;;  %vm37_vm4 = vcmp.ne.s32.totalorder %v35_v8, 0 }
  0x99   :  { %v72_v12 = vmul.f32 %v70_v10, %v70_v10  ;;  %v45_v11 = vsub.s32 0, %v31_v9  ;;  %vm34_vm6 = vcmp.le.s32.totalorder %v33_v16, %v31_v9 }
  0x9b   :  { %v76_v13 = vsel %vm59_vm0, %v72_v12, 0.0  ;;  %v3240_v12 = vmov 0  }
  0x9c   :  { %77 = vadd.xlane.f32.xlu1 %v76_v13  ;;  %v41_v13 = vsel %vm37_vm4, 1, %v3240_v12 }
 0x125   :  { %v75_v17 = vpop.xlane.xlu1 %74 }
 0x126   :  { %v79_v18 = vmul.f32 0.03125, %v75_v17  ;;  %v46_v17 = vrot.slane %v41_v13, %v45_v11 }
 0x128   :  { %v81_v19 = vadd.f32 1e-05, %v79_v18  ;;  %vm51_vm7 = vcmp.eq.s32.totalorder %v46_v17, 1 }
 0x129   :  { %v78_v20 = vpop.xlane.xlu1 %77  ;;  %vm3396_vm9 = vmand %vm34_vm6, %vm51_vm7 }
 0x12a   :  { %3178 = vrsqrt.f32 %v81_v19  ;;  %v80_v21 = vmul.f32 0.03125, %v78_v20 }
 0x12c   :  { %v82_v22 = vadd.f32 1e-05, %v80_v21 }
 0x12e   :  { %3180 = vrsqrt.f32 %v82_v22 }
 0x134   :  { %v3179_v23 = vpop.eup %3178 }
 0x135   :  { %v85_v24 = vmul.f32 %v3179_v23, %v69_v6 }
 0x137   :  { %v91_v27 = vmul.f32 %v2559_v25, %v85_v24 }
 0x138   :  { %v3181_v26 = vpop.eup %3180 }
 0x139   :  { %v86_v28 = vmul.f32 %v3181_v26, %v70_v10  ;;  %v97_v31 = vadd.f32 %v2560_v29, %v91_v27  ;;  %v36_v10 = vld [vmem:[%s3871_s1 + $0x1] sm:$0x1]  ;;  %s3241_s1 = smov 112  }
 0x13a   :  { %vm38_vm5 = vcmp.ne.s32.totalorder %v36_v10, 0 }
 0x13b   :  { %v92_v30 = vmul.f32 %v2559_v25, %v86_v28  ;;  %v42_v14 = vsel %vm38_vm5, 1, %v3240_v12 }
 0x13c   :  { %v50_v18 = vrot.slane %v42_v14, %v45_v11 }
 0x13d   :  { %v98_v32 = vadd.f32 %v2560_v29, %v92_v30 }
 0x13e   :  { %vm52_vm8 = vcmp.eq.s32.totalorder %v50_v18, 1 }
 0x13f   :  { %v3328_v34 = vpack.c.bf16 %v98_v32, %v97_v31  ;;  %vm3400_vm11 = vmand %vm34_vm6, %vm52_vm8 }
 0x141   :  { %2859 = vmatmul.mubr.msk.bf16.vlgmr.msra.gmra.mrb[0].mxu1 %vm59_vm0, %v3328_v34 }
 0x142   :  { %2863 = vmatpush3.bf16.msra.mxu1 %v3132_v33  ;;  %2866 = vmatprep.mubr.msk.bf16.mxu1 %vm3239_vm1, %v3238_v15 }
 0x143   :  { %2864 = vmatprep.subr.bf16.mxu1 %v3238_v15 }
 0x146   :  { %2865 = vmatpush3.bf16.msra.mxu1 %v3133_v35 }
 0x147   :  { %2870 = vmatprep.subr.bf16.mxu1 %v3238_v15 }
 0x149   :  { %2867 = vmatmul.mubr.msk.bf16.vlgmr.msra.gmra.mrb[4].mxu1 %vm59_vm0, %v3328_v34 }
 0x14a   :  { %2871 = vmatpush3.bf16.msra.mxu1 %v3134_v36  ;;  %2874 = vmatprep.mubr.msk.bf16.mxu1 %vm3239_vm1, %v3238_v15 }
 0x14b   :  { %2872 = vmatprep.subr.bf16.mxu1 %v3238_v15 }
 0x14e   :  { %2873 = vmatpush3.bf16.msra.mxu1 %v3135_v37 }
 0x14f   :  { %2878 = vmatprep.subr.bf16.mxu1 %v3238_v15 }
 0x151   :  { %2875 = vmatmul.mubr.msk.bf16.vlgmr.msra.gmra.mrb[8].mxu1 %vm59_vm0, %v3328_v34 }
 0x152   :  { %2880 = vmatprep.mubr.msk.bf16.mxu1 %vm3239_vm1, %v3238_v15 }
 0x214   :  { %v158_v38 = vpop.f32.mrb[0].mxu1 }
 0x215   :  { %v2860_v39 = vpop.f32.mrb[1].mxu1  ;;  %v159_v54 = vadd.f32 %v3365_v50, %v158_v38 }
 0x216   :  { %v161_v40 = vpop.f32.mrb[2].mxu1 }
 0x217   :  { %v2861_v41 = vpop.f32.mrb[3].mxu1  ;;  %v162_v57 = vadd.f32 %v3365_v50, %v161_v40  ;;  %v291_v61 = vpack.c.bf16 %v159_v54, %v159_v54  ;;  %v3136_v54 = vld [vmem:[%s3869_s2 + $0x10] sm:$0xff]  }
 0x219   :  { %v292_v3 = vpack.c.bf16 %v162_v57, %v162_v57  ;;  %v3138_v57 = vld [vmem:[%s3869_s2 + $0x18] sm:$0xff]  }
 0x21c   :  { %v221_v43 = vpop.f32.mrb[4].mxu1 }
 0x21d   :  { %v222_v44 = vadd.f32 %v3358_v42, %v221_v43  ;;  %v2868_v45 = vpop.f32.mrb[5].mxu1 }
 0x21e   :  { %v224_v46 = vpop.f32.mrb[6].mxu1 }
 0x21f   :  { %v293_v47 = vpack.c.bf16 %v222_v44, %v222_v44  ;;  %v225_v48 = vadd.f32 %v3358_v42, %v224_v46  ;;  %v2869_v49 = vpop.f32.mrb[7].mxu1 }
 0x221   :  { %v302_v51 = vsel %vm297_vm2, %v293_v47, 0  ;;  %v294_v52 = vpack.c.bf16 %v225_v48, %v225_v48 }
 0x222   :  { %2879 = vmatpush3.bf16.xpose.msra.mxu1 %v302_v51 }
 0x223   :  { %v348_v55 = vsel %vm297_vm2, %v294_v52, 0  ;;  %2890 = vmatprep.subr.bf16.mxu1 %v3238_v15 }
 0x224   :  { %v284_v56 = vpop.f32.mrb[8].mxu1  ;;  %2885 = vmatpush3.bf16.xpose.msra.mxu0 %v348_v55 }
 0x225   :  { %v285_v58 = vadd.f32 %v3371_v53, %v284_v56  ;;  %v2876_v59 = vpop.f32.mrb[9].mxu1  ;;  %2896 = vmatprep.subr.bf16.mxu0 %v3238_v15 }
 0x226   :  { %v287_v60 = vpop.f32.mrb[10].mxu1  ;;  %v3140_v59 = vld [vmem:[%s3869_s2 + $0x50] sm:$0xff]  }
 0x227   :  { %v295_v62 = vpack.c.bf16 %v285_v58, %v285_v58  ;;  %v288_v63 = vadd.f32 %v3371_v53, %v287_v60  ;;  %v2877_v2 = vpop.f32.mrb[11].mxu1  ;;  %v3139_v58 = vld [vmem:[%s3869_s2 + $0x38] sm:$0xff]  }
 0x228   :  { %v3141_v60 = vld [vmem:[%s3869_s2 + $0x58] sm:$0xff]  }
 0x229   :  { %v424_v4 = vsel %vm422_vm3, %v295_v62, 0  ;;  %v296_v5 = vpack.c.bf16 %v288_v63, %v288_v63  ;;  %2881 = vmatmul.mubr.msk.bf16.vlgmr.msra.gmra.mrb[12].mxu1 %vm297_vm2, %v291_v61 }
 0x22a   :  { %2891 = vmatpush3.bf16.msra.mxu1 %v424_v4  ;;  %2892 = vmatprep.mubr.msk.bf16.mxu1 %vm3239_vm1, %v3238_v15 }
 0x22b   :  { %v470_v6 = vsel %vm422_vm3, %v296_v5, 0  ;;  %2887 = vmatmul.mubr.msk.bf16.vlgmr.msra.gmra.mrb[0].mxu0 %vm297_vm2, %v292_v3  ;;  %2902 = vmatprep.subr.bf16.mxu1 %v3238_v15 }
 0x22c   :  { %2897 = vmatpush3.bf16.msra.mxu0 %v470_v6  ;;  %2898 = vmatprep.mubr.msk.bf16.mxu0 %vm3239_vm1, %v3238_v15 }
 0x22d   :  { %2910 = vmatprep.subr.bf16.mxu0 %v3238_v15 }
 0x2fc   :  { %v338_v19 = vpop.f32.mrb[12].mxu1 }
 0x2fd   :  { %v390_v21 = vmul.f32 0.25, %v338_v19  ;;  %v2882_v22 = vpop.f32.mrb[13].mxu1 }
 0x2fe   :  { %v341_v23 = vpop.f32.mrb[14].mxu1  ;;  %v384_v24 = vpop.f32.mrb[0].mxu0 }
 0x2ff   :  { %v391_v26 = vmul.f32 0.25, %v384_v24  ;;  %v2883_v27 = vpop.f32.mrb[15].mxu1  ;;  %v2888_v28 = vpop.f32.mrb[1].mxu0  ;;  %v392_v29 = vsel %vm3396_vm9, %v390_v21, -1e+09 }
 0x300   :  { %v387_v30 = vpop.f32.mrb[2].mxu0  ;;  %v395_v31 = vsel %vm394_vm10, %v392_v29, -inf }
 0x301   :  { %v2889_v32 = vpop.f32.mrb[3].mxu0  ;;  %396 = vmax.xlane.f32.xlu1 %v395_v31  ;;  %v393_v33 = vsel %vm3400_vm11, %v391_v26, -1e+09 }
 0x302   :  { %v398_v35 = vsel %vm394_vm10, %v393_v33, -inf }
 0x303   :  { %399 = vmax.xlane.f32.xlu0 %v398_v35 }
 0x38e   :  { %v397_v36 = vpop.xlane.xlu1 %396 }
 0x38f   :  { %v401_v37 = vsub.f32 %v392_v29, %v397_v36 }
 0x390   :  { %v400_v38 = vpop.xlane.xlu0 %399 }
 0x391   :  { %v403_v39 = vmul.f32 1.442695, %v401_v37  ;;  %v402_v40 = vsub.f32 %v393_v33, %v400_v38 }
 0x393   :  { %3182 = vpow2.f32 %v403_v39  ;;  %v405_v41 = vmul.f32 1.442695, %v402_v40 }
 0x395   :  { %3184 = vpow2.f32 %v405_v41 }
 0x39d   :  { %v3183_v43 = vpop.eup %3182 }
 0x39e   :  { %v407_v44 = vsel %vm394_vm10, %v3183_v43, 0.0 }
 0x39f   :  { %v3185_v45 = vpop.eup %3184  ;;  %408 = vadd.xlane.f32.xlu1 %v407_v44 }
 0x3a0   :  { %v410_v46 = vsel %vm394_vm10, %v3185_v45, 0.0 }
 0x3a1   :  { %411 = vadd.xlane.f32.xlu0 %v410_v46 }
 0x3b0   :  { %538 = vrot.lane.b32.xlu1 %v3365_v50, %s3241_s1  ;;  %v3137_v50 = vld [vmem:[%s3869_s2 + $0x30] sm:$0xff]  }
 0x3b7   :  { %605 = vrot.lane.b32.xlu0 %v3358_v42, %s3241_s1 }
 0x42c   :  { %v409_v47 = vpop.xlane.xlu1 %408 }
 0x42d   :  { %3186 = vrcp.f32 %v409_v47 }
 0x42e   :  { %v412_v48 = vpop.xlane.xlu0 %411 }
 0x42f   :  { %3188 = vrcp.f32 %v412_v48 }
 0x430   :  { %v539_v21 = vpop.permute.xlu1 %538 }
 0x432   :  { %v606_v9 = vpop.permute.xlu0 %605 }
 0x437   :  { %v3187_v49 = vpop.eup %3186 }
 0x438   :  { %v415_v51 = vmul.f32 %v3187_v49, %v3183_v43 }
 0x439   :  { %v3189_v52 = vpop.eup %3188 }
 0x43a   :  { %v416_v55 = vmul.f32 %v3189_v52, %v3185_v45  ;;  %v417_v56 = vpack.c.bf16 %v415_v51, %v415_v51 }
 0x43c   :  { %2893 = vmatmul.mubr.msk.bf16.vlgmr.msra.gmra.mrb[16].mxu1 %vm394_vm10, %v417_v56  ;;  %v418_v42 = vpack.c.bf16 %v416_v55, %v416_v55 }
 0x43d   :  { %2903 = vmatpush3.bf16.msra.mxu1 %v3136_v54  ;;  %2906 = vmatprep.mubr.msk.bf16.mxu1 %vm3239_vm1, %v3238_v15 }
 0x43e   :  { %2899 = vmatmul.mubr.msk.bf16.vlgmr.msra.gmra.mrb[4].mxu0 %vm394_vm10, %v418_v42  ;;  %2904 = vmatprep.subr.bf16.mxu1 %v3238_v15 }
 0x43f   :  { %2911 = vmatpush3.bf16.msra.mxu0 %v3137_v50  ;;  %2914 = vmatprep.mubr.msk.bf16.mxu0 %vm3239_vm1, %v3238_v15 }
 0x440   :  { %2912 = vmatprep.subr.bf16.mxu0 %v3238_v15 }
 0x441   :  { %2905 = vmatpush3.bf16.msra.mxu1 %v3138_v57 }
 0x442   :  { %2918 = vmatprep.subr.bf16.mxu1 %v3238_v15 }
 0x443   :  { %2913 = vmatpush3.bf16.msra.mxu0 %v3139_v58 }
 0x444   :  { %2907 = vmatmul.mubr.msk.bf16.vlgmr.msra.gmra.mrb[20].mxu1 %vm59_vm0, %v3328_v34  ;;  %2926 = vmatprep.subr.bf16.mxu0 %v3238_v15 }
 0x445   :  { %2919 = vmatpush3.bf16.msra.mxu1 %v3140_v59  ;;  %2922 = vmatprep.mubr.msk.bf16.mxu1 %vm3239_vm1, %v3238_v15 }
 0x446   :  { %2915 = vmatmul.mubr.msk.bf16.vlgmr.msra.gmra.mrb[8].mxu0 %vm59_vm0, %v3328_v34  ;;  %2920 = vmatprep.subr.bf16.mxu1 %v3238_v15 }
 0x447   :  { %2928 = vmatprep.mubr.msk.bf16.mxu0 %vm3239_vm1, %v3238_v15 }
 0x449   :  { %2921 = vmatpush3.bf16.msra.mxu1 %v3141_v60 }
 0x44a   :  { %2932 = vmatprep.subr.bf16.mxu1 %v3238_v15 }
 0x44c   :  { %2923 = vmatmul.mubr.msk.bf16.vlgmr.msra.gmra.mrb[24].mxu1 %vm59_vm0, %v3328_v34 }
 0x44d   :  { %2934 = vmatprep.mubr.msk.bf16.mxu1 %vm3239_vm1, %v3238_v15 }
 0x50f   :  { %v3458_v61 = vpop.f32.mrb[16].mxu1 }
 0x510   :  { %v2894_v62 = vpop.f32.mrb[17].mxu1 }
 0x511   :  { %v463_v63 = vpop.f32.mrb[18].mxu1  ;;  %v3460_v2 = vpop.f32.mrb[4].mxu0 }
 0x512   :  { %v512_v3 = vpack.c.bf16 %v3460_v2, %v3458_v61  ;;  %v2895_v4 = vpop.f32.mrb[19].mxu1  ;;  %v2900_v5 = vpop.f32.mrb[5].mxu0 }
 0x513   :  { %v509_v6 = vpop.f32.mrb[6].mxu0 }
 0x514   :  { %v2901_v7 = vpop.f32.mrb[7].mxu0 }
 0x517   :  { %v575_v8 = vpop.f32.mrb[20].mxu1 }
 0x518   :  { %v2908_v10 = vpop.f32.mrb[21].mxu1  ;;  %v576_v26 = vadd.f32 %v575_v8, %v539_v21 }
 0x519   :  { %v578_v34 = vpop.f32.mrb[22].mxu1  ;;  %v642_v11 = vpop.f32.mrb[8].mxu0 }
 0x51a   :  { %v643_v12 = vadd.f32 %v642_v11, %v606_v9  ;;  %v2909_v13 = vpop.f32.mrb[23].mxu1  ;;  %v2916_v14 = vpop.f32.mrb[9].mxu0  ;;  %v579_v30 = vadd.f32 %v578_v34, %v539_v21  ;;  %v716_v32 = vpack.c.bf16 %v576_v26, %v576_v26  ;;  %v3143_v11 = vld [vmem:[%s3872_s3 + $0x8] sm:$0xff]  }
 0x51b   :  { %v645_v16 = vpop.f32.mrb[10].mxu0  ;;  %v3142_v14 = vld [vmem:[%s3872_s3] sm:$0xff]  }
 0x51c   :  { %v718_v17 = vpack.c.bf16 %v643_v12, %v643_v12  ;;  %v646_v18 = vadd.f32 %v645_v16, %v606_v9  ;;  %v2917_v19 = vpop.f32.mrb[11].mxu0  ;;  %v717_v33 = vpack.c.bf16 %v579_v30, %v579_v30 }
 0x51e   :  { %v726_v22 = vsel %vm297_vm2, %v718_v17, 0  ;;  %v719_v23 = vpack.c.bf16 %v646_v18, %v646_v18 }
 0x51f   :  { %v709_v24 = vpop.f32.mrb[24].mxu1  ;;  %2927 = vmatpush3.bf16.xpose.msra.mxu0 %v726_v22 }
 0x520   :  { %v772_v27 = vsel %vm297_vm2, %v719_v23, 0  ;;  %v2924_v28 = vpop.f32.mrb[25].mxu1  ;;  %2938 = vmatprep.subr.bf16.mxu0 %v3238_v15 }
 0x521   :  { %v712_v29 = vpop.f32.mrb[26].mxu1  ;;  %2933 = vmatpush3.bf16.xpose.msra.mxu1 %v772_v27 }
 0x522   :  { %v2925_v31 = vpop.f32.mrb[27].mxu1  ;;  %2944 = vmatprep.subr.bf16.mxu1 %v3238_v15 }
 0x526   :  { %2929 = vmatmul.mubr.msk.bf16.vlgmr.msra.gmra.mrb[12].mxu0 %vm297_vm2, %v716_v32  ;;  %v2619_v32 = vld [vmem:[%s3870_s6 + $0x5] ss:$0 sm:$0xff] }
 0x527   :  { %2940 = vmatprep.mubr.msk.bf16.mxu0 %vm3239_vm1, %v3238_v15 }
 0x528   :  { %2935 = vmatmul.mubr.msk.bf16.vlgmr.msra.gmra.mrb[28].mxu1 %vm297_vm2, %v717_v33 }
 0x529   :  { %2946 = vmatprep.mubr.msk.bf16.mxu1 %vm3239_vm1, %v3238_v15 }
 0x5f9   :  { %v762_v35 = vpop.f32.mrb[12].mxu0 }
 0x5fa   :  { %v814_v36 = vmul.f32 0.25, %v762_v35  ;;  %v2930_v37 = vpop.f32.mrb[13].mxu0 }
 0x5fb   :  { %v765_v38 = vpop.f32.mrb[14].mxu0  ;;  %v808_v39 = vpop.f32.mrb[28].mxu1 }
 0x5fc   :  { %v815_v40 = vmul.f32 0.25, %v808_v39  ;;  %v2931_v41 = vpop.f32.mrb[15].mxu0  ;;  %v2936_v43 = vpop.f32.mrb[29].mxu1  ;;  %v816_v44 = vsel %vm3396_vm9, %v814_v36, -1e+09 }
 0x5fd   :  { %v811_v45 = vpop.f32.mrb[30].mxu1  ;;  %v818_v46 = vsel %vm394_vm10, %v816_v44, -inf }
 0x5fe   :  { %819 = vmax.xlane.f32.xlu1 %v818_v46  ;;  %v2937_v47 = vpop.f32.mrb[31].mxu1  ;;  %v817_v48 = vsel %vm3400_vm11, %v815_v40, -1e+09 }
 0x5ff   :  { %v821_v49 = vsel %vm394_vm10, %v817_v48, -inf }
 0x600   :  { %822 = vmax.xlane.f32.xlu0 %v821_v49 }
 0x68b   :  { %v820_v51 = vpop.xlane.xlu1 %819 }
 0x68c   :  { %v824_v52 = vsub.f32 %v816_v44, %v820_v51 }
 0x68d   :  { %v823_v54 = vpop.xlane.xlu0 %822 }
 0x68e   :  { %v826_v55 = vmul.f32 1.442695, %v824_v52  ;;  %v825_v56 = vsub.f32 %v817_v48, %v823_v54  ;;  %v3144_v54 = vld [vmem:[%s3873_s4] sm:$0xff]  }
 0x690   :  { %3190 = vpow2.f32 %v826_v55  ;;  %v828_v50 = vmul.f32 1.442695, %v825_v56  ;;  %v3145_v55 = vld [vmem:[%s3873_s4 + $0x8] sm:$0xff]  }
 0x692   :  { %3192 = vpow2.f32 %v828_v50 }
 0x69a   :  { %v3191_v42 = vpop.eup %3190 }
 0x69b   :  { %v830_v57 = vsel %vm394_vm10, %v3191_v42, 0.0 }
 0x69c   :  { %v3193_v58 = vpop.eup %3192  ;;  %831 = vadd.xlane.f32.xlu0 %v830_v57 }
 0x69d   :  { %v833_v59 = vsel %vm394_vm10, %v3193_v58, 0.0 }
 0x69e   :  { %834 = vadd.xlane.f32.xlu1 %v833_v59 }
 0x6b2   :  { %672 = vrot.lane.b32.xlu0 %v3371_v53, %s3241_s1 }
 0x729   :  { %v832_v60 = vpop.xlane.xlu0 %831 }
 0x72a   :  { %3194 = vrcp.f32 %v832_v60 }
 0x72b   :  { %v835_v62 = vpop.xlane.xlu1 %834 }
 0x72c   :  { %3196 = vrcp.f32 %v835_v62 }
 0x72d   :  { %v673_v63 = vpop.permute.xlu0 %672 }
 0x72e   :  { %v710_v4 = vadd.f32 %v709_v24, %v673_v63  ;;  %v713_v5 = vadd.f32 %v712_v29, %v673_v63  ;;  %v2620_v63 = vld [vmem:[%s3870_s6 + $0x6] ss:$0 sm:$0xff] }
 0x730   :  { %v720_v6 = vpack.c.bf16 %v710_v4, %v710_v4  ;;  %v721_v7 = vpack.c.bf16 %v713_v5, %v713_v5 }
 0x732   :  { %v846_v8 = vsel %vm422_vm3, %v720_v6, 0  ;;  %v892_v9 = vsel %vm422_vm3, %v721_v7, 0  ;;  %v2621_v7 = vld [vmem:[%s3870_s6 + $0x7] ss:$0 sm:$0xff] }
 0x733   :  { %2939 = vmatpush3.bf16.msra.mxu0 %v846_v8  ;;  %2945 = vmatpush3.bf16.msra.mxu1 %v892_v9 }
 0x734   :  { %v3195_v10 = vpop.eup %3194  ;;  %2956 = vmatprep.subr.bf16.mxu1 %v3238_v15  ;;  %2950 = vmatprep.subr.bf16.mxu0 %v3238_v15 }
 0x735   :  { %v838_v53 = vmul.f32 %v3195_v10, %v3191_v42 }
 0x736   :  { %v3197_v34 = vpop.eup %3196 }
 0x737   :  { %v839_v12 = vmul.f32 %v3197_v34, %v3193_v58  ;;  %v840_v13 = vpack.c.bf16 %v838_v53, %v838_v53  ;;  %v3146_v34 = vld [vmem:[%s3874_s5] sm:$0xff]  }
 0x739   :  { %2941 = vmatmul.mubr.msk.bf16.vlgmr.msra.gmra.mrb[16].mxu0 %vm394_vm10, %v840_v13  ;;  %v841_v16 = vpack.c.bf16 %v839_v12, %v839_v12  ;;  %v3148_v12 = vld [vmem:[%s3874_s5 + $0x10] sm:$0xff]   ;;  %v3149_v13 = vld [vmem:[%s3874_s5 + $0x18] sm:$0xff]  }
 0x73a   :  { %2951 = vmatpush3.bf16.msra.mxu0 %v3143_v11  ;;  %2952 = vmatprep.mubr.msk.bf16.mxu0 %vm3239_vm1, %v3238_v15  ;;  %v3147_v11 = vld [vmem:[%s3874_s5 + $0x8] sm:$0xff]  }
 0x73b   :  { %2947 = vmatmul.mubr.msk.bf16.vlgmr.msra.gmra.mrb[32].mxu1 %vm394_vm10, %v841_v16  ;;  %2962 = vmatprep.subr.bf16.mxu0 %v3238_v15  ;;  %v3151_v16 = vld [vmem:[%s3874_s5 + $0x28] sm:$0xff]  }
 0x73c   :  { %2957 = vmatpush3.bf16.msra.mxu1 %v3142_v14  ;;  %2958 = vmatprep.mubr.msk.bf16.mxu1 %vm3239_vm1, %v3238_v15  ;;  %v3150_v14 = vld [vmem:[%s3874_s5 + $0x20] sm:$0xff]  }
 0x73d   :  { %2970 = vmatprep.subr.bf16.mxu1 %v3238_v15 }
 0x743   :  { %2959 = vmatmul.mubr.msk.bf16.vlgmr.msra.gmra.mrb[36].mxu1 %vm297_vm2, %v512_v3 }
 0x744   :  { %2986 = vmatprep.mubr.msk.bf16.mxu1 %vm3239_vm1, %v3238_v15  ;;  %2971 = vmatpush3.bf16.msra.mxu1 %v3146_v34 }
 0x745   :  { %2972 = vmatprep.subr.bf16.mxu1 %v3238_v15 }
 0x748   :  { %2973 = vmatpush3.bf16.msra.mxu1 %v3147_v11 }
 0x749   :  { %2974 = vmatprep.subr.bf16.mxu1 %v3238_v15 }
 0x74c   :  { %2975 = vmatpush3.bf16.msra.mxu1 %v3148_v12 }
 0x74d   :  { %2976 = vmatprep.subr.bf16.mxu1 %v3238_v15 }
 0x750   :  { %2977 = vmatpush3.bf16.msra.mxu1 %v3149_v13 }
 0x751   :  { %2978 = vmatprep.subr.bf16.mxu1 %v3238_v15 }
 0x754   :  { %2979 = vmatpush3.bf16.msra.mxu1 %v3150_v14 }
 0x755   :  { %2980 = vmatprep.subr.bf16.mxu1 %v3238_v15 }
 0x758   :  { %2981 = vmatpush3.bf16.msra.mxu1 %v3151_v16  ;;  %v2637_v16 = vld [vmem:[%s3870_s6 + $0x8] ss:$0 sm:$0xff] }
 0x759   :  { %2982 = vmatprep.subr.bf16.mxu1 %v3238_v15 }
 0x80c   :  { %v882_v17 = vpop.f32.mrb[16].mxu0 }
 0x80d   :  { %v2942_v18 = vpop.f32.mrb[17].mxu0 }
 0x80e   :  { %v885_v19 = vpop.f32.mrb[18].mxu0  ;;  %v928_v21 = vpop.f32.mrb[32].mxu1  ;;  %v3153_v18 = vld [vmem:[%s3874_s5 + $0x38] sm:$0xff]  }
 0x80f   :  { %v934_v22 = vpack.c.bf16 %v928_v21, %v882_v17  ;;  %v2943_v23 = vpop.f32.mrb[19].mxu0  ;;  %v2948_v24 = vpop.f32.mrb[33].mxu1  ;;  %v3152_v17 = vld [vmem:[%s3874_s5 + $0x30] sm:$0xff]   ;;  %v2622_v19 = vld [vmem:[%s3875_s7] ss:$0 sm:$0xff] }
 0x810   :  { %v931_v26 = vpop.f32.mrb[34].mxu1  ;;  %2983 = vmatpush3.bf16.msra.mxu1 %v3152_v17 }
 0x811   :  { %v2949_v27 = vpop.f32.mrb[35].mxu1  ;;  %2953 = vmatmul.mubr.msk.bf16.vlgmr.msra.gmra.mrb[20].mxu0 %vm297_vm2, %v934_v22  ;;  %2984 = vmatprep.subr.bf16.mxu1 %v3238_v15 }
 0x812   :  { %2966 = vmatprep.mubr.msk.bf16.mxu0 %vm3239_vm1, %v3238_v15  ;;  %2963 = vmatpush3.bf16.msra.mxu0 %v3144_v54 }
 0x813   :  { %2964 = vmatprep.subr.bf16.mxu0 %v3238_v15 }
 0x814   :  { %2985 = vmatpush3.bf16.msra.mxu1 %v3153_v18 }
 0x815   :  { %3020 = vmatprep.subr.bf16.mxu1 %v3238_v15 }
 0x816   :  { %v1031_v61 = vpop.f32.mrb[36].mxu1  ;;  %2965 = vmatpush3.bf16.msra.mxu0 %v3145_v55 }
 0x817   :  { %v2960_v2 = vpop.f32.mrb[37].mxu1  ;;  %2990 = vmatprep.subr.bf16.mxu0 %v3238_v15 }
 0x818   :  { %v1034_v3 = vpop.f32.mrb[38].mxu1 }
 0x819   :  { %v2961_v28 = vpop.f32.mrb[39].mxu1 }
 0x8e4   :  { %v981_v29 = vpop.f32.mrb[20].mxu0 }
 0x8e5   :  { %v1032_v30 = vadd.f32 %v1031_v61, %v981_v29  ;;  %v2954_v31 = vpop.f32.mrb[21].mxu0 }
 0x8e6   :  { %v984_v33 = vpop.f32.mrb[22].mxu0 }
 0x8e7   :  { %v1038_v35 = vadd.f32 %v1032_v30, %v3290_v0  ;;  %v1035_v36 = vadd.f32 %v1034_v3, %v984_v33  ;;  %v2955_v37 = vpop.f32.mrb[23].mxu0 }
 0x8e9   :  { %v3515_v38 = vadd.f32 %v2619_v32, %v1038_v35  ;;  %v1039_v39 = vadd.f32 %v1035_v36, %v3295_v1 }
 0x8eb   :  { %v3518_v40 = vadd.f32 %v2619_v32, %v1039_v39  ;;  %v1049_v41 = vsel %vm59_vm0, %v3515_v38, 0.0 }
 0x8ec   :  { %1050 = vadd.xlane.f32.xlu1 %v1049_v41 }
 0x8ed   :  { %v1052_v43 = vsel %vm59_vm0, %v3518_v40, 0.0 }
 0x8f0   :  { %1053 = vadd.xlane.f32.xlu1 %v1052_v43 }
 0x979   :  { %v1051_v44 = vpop.xlane.xlu1 %1050 }
 0x97a   :  { %v1055_v45 = vmul.f32 0.03125, %v1051_v44 }
 0x97c   :  { %v1057_v0 = vsub.f32 %v3515_v38, %v1055_v45 }
 0x97d   :  { %v1054_v46 = vpop.xlane.xlu1 %1053 }
 0x97e   :  { %v1056_v47 = vmul.f32 0.03125, %v1054_v46  ;;  %v1059_v48 = vmul.f32 %v1057_v0, %v1057_v0 }
 0x980   :  { %v1058_v49 = vsub.f32 %v3518_v40, %v1056_v47  ;;  %v1061_v1 = vsel %vm59_vm0, %v1059_v48, 0.0  ;;  %v2626_v47 = vld [vmem:[%s3875_s7 + $0x1] ss:$0 sm:$0xff] }
 0x981   :  { %1062 = vadd.xlane.f32.xlu1 %v1061_v1 }
 0x982   :  { %v1060_v51 = vmul.f32 %v1058_v49, %v1058_v49 }
 0x984   :  { %v1064_v52 = vsel %vm59_vm0, %v1060_v51, 0.0 }
 0x985   :  { %1065 = vadd.xlane.f32.xlu1 %v1064_v52 }
 0xa0e   :  { %v1063_v56 = vpop.xlane.xlu1 %1062 }
 0xa0f   :  { %v1067_v50 = vmul.f32 0.03125, %v1063_v56 }
 0xa11   :  { %v1069_v42 = vadd.f32 1e-05, %v1067_v50 }
 0xa12   :  { %v1066_v57 = vpop.xlane.xlu1 %1065 }
 0xa13   :  { %3198 = vrsqrt.f32 %v1069_v42  ;;  %v1068_v58 = vmul.f32 0.03125, %v1066_v57 }
 0xa15   :  { %v1070_v59 = vadd.f32 1e-05, %v1068_v58 }
 0xa17   :  { %3200 = vrsqrt.f32 %v1070_v59 }
 0xa1d   :  { %v3199_v60 = vpop.eup %3198 }
 0xa1e   :  { %v1073_v62 = vmul.f32 %v3199_v60, %v1057_v0 }
 0xa20   :  { %v1079_v5 = vmul.f32 %v2620_v63, %v1073_v62 }
 0xa21   :  { %v3201_v4 = vpop.eup %3200 }
 0xa22   :  { %v1074_v6 = vmul.f32 %v3201_v4, %v1058_v49  ;;  %v1085_v9 = vadd.f32 %v2621_v7, %v1079_v5 }
 0xa24   :  { %v1080_v8 = vmul.f32 %v2620_v63, %v1074_v6  ;;  %v3154_v6 = vld [vmem:[%s3869_s2 + $0x60] sm:$0xff]  }
 0xa26   :  { %v1086_v10 = vadd.f32 %v2621_v7, %v1080_v8  ;;  %v3155_v7 = vld [vmem:[%s3869_s2 + $0x68] sm:$0xff]  }
 0xa27   :  { %v2644_v8 = vld [vmem:[%s3870_s6 + $0xa] ss:$0 sm:$0xff] }
 0xa28   :  { %v1087_v53 = vpack.c.bf16 %v1086_v10, %v1085_v9 }
 0xa2a   :  { %2967 = vmatmul.mubr.msk.bf16.vlgmr.msra.gmra.mrb[24].mxu0 %vm59_vm0, %v1087_v53 }
 0xa2b   :  { %2994 = vmatprep.mubr.msk.bf16.mxu0 %vm3239_vm1, %v3238_v15  ;;  %2991 = vmatpush3.bf16.msra.mxu0 %v3154_v6 }
 0xa2c   :  { %2992 = vmatprep.subr.bf16.mxu0 %v3238_v15 }
 0xa2f   :  { %2993 = vmatpush3.bf16.msra.mxu0 %v3155_v7 }
 0xa30   :  { %2998 = vmatprep.subr.bf16.mxu0 %v3238_v15 }
 0xafd   :  { %v1146_v21 = vpop.f32.mrb[24].mxu0 }
 0xafe   :  { %v1147_v22 = vadd.f32 %v2622_v19, %v1146_v21  ;;  %v2968_v23 = vpop.f32.mrb[25].mxu0  ;;  %v2638_v21 = vld [vmem:[%s3870_s6 + $0x9] ss:$0 sm:$0xff] }
 0xaff   :  { %v1149_v24 = vpop.f32.mrb[26].mxu0 }
 0xb00   :  { %v1155_v26 = vmul.f32 0.044715, %v1147_v22  ;;  %v1150_v27 = vadd.f32 %v2622_v19, %v1149_v24  ;;  %v2969_v61 = vpop.f32.mrb[27].mxu0  ;;  %v1153_v41 = vmul.f32 0.5, %v1147_v22 }
 0xb01   :  { %v3157_v61 = vld [vmem:[%s3869_s2 + $0x88] sm:$0xff]  }
 0xb02   :  { %v1157_v2 = vmul.f32 %v1155_v26, %v1147_v22  ;;  %v1156_v3 = vmul.f32 0.044715, %v1150_v27  ;;  %v1154_v43 = vmul.f32 0.5, %v1150_v27  ;;  %v3156_v26 = vld [vmem:[%s3869_s2 + $0x80] sm:$0xff]  }
 0xb04   :  { %v1159_v28 = vmul.f32 %v1157_v2, %v1147_v22  ;;  %v1158_v29 = vmul.f32 %v1156_v3, %v1150_v27  ;;  %v3158_v2 = vld [vmem:[%s3869_s2 + $0xa0] sm:$0xff]   ;;  %v3159_v3 = vld [vmem:[%s3869_s2 + $0xa8] sm:$0xff]  }
 0xb06   :  { %v1161_v30 = vadd.f32 %v1159_v28, %v1147_v22  ;;  %v1160_v31 = vmul.f32 %v1158_v29, %v1150_v27 }
 0xb08   :  { %v1163_v32 = vmul.f32 0.7978846, %v1161_v30  ;;  %v1162_v33 = vadd.f32 %v1160_v31, %v1150_v27 }
 0xb0a   :  { %3202 = vtanh.f32 %v1163_v32  ;;  %v1164_v35 = vmul.f32 0.7978846, %v1162_v33  ;;  %v3650_v32 = vld [vmem:[%s3870_s6 + $0xb] ss:$0 sm:$0xff] }
 0xb0c   :  { %3204 = vtanh.f32 %v1164_v35 }
 0xb14   :  { %v3203_v36 = vpop.eup %3202 }
 0xb15   :  { %v1167_v37 = vadd.f32 1.0, %v3203_v36 }
 0xb16   :  { %v3205_v39 = vpop.eup %3204 }
 0xb17   :  { %v1168_v44 = vadd.f32 1.0, %v3205_v39  ;;  %v1169_v45 = vmul.f32 %v1167_v37, %v1153_v41 }
 0xb19   :  { %v1170_v0 = vmul.f32 %v1168_v44, %v1154_v43 }
 0xb1b   :  { %v1171_v46 = vpack.c.bf16 %v1170_v0, %v1169_v45  ;;  %v3658_v0 = vld [vmem:[%s3870_s6 + $0xc] ss:$0 sm:$0xff] }
 0xb1d   :  { %2987 = vmatmul.mubr.bf16.vlgmr.msra.gmra.mrb[40].mxu1 %v1171_v46 }
 0xb1e   :  { %3022 = vmatprep.mubr.msk.bf16.mxu1 %vm3239_vm1, %v3238_v15 }
 0xbf0   :  { %v1275_v48 = vpop.f32.mrb[40].mxu1 }
 0xbf1   :  { %v1276_v49 = vadd.f32 %v2626_v47, %v1275_v48  ;;  %v2988_v1 = vpop.f32.mrb[41].mxu1 }
 0xbf2   :  { %v1278_v51 = vpop.f32.mrb[42].mxu1 }
 0xbf3   :  { %v3586_v52 = vadd.f32 %v1276_v49, %v3515_v38  ;;  %v1279_v54 = vadd.f32 %v2626_v47, %v1278_v51  ;;  %v2989_v55 = vpop.f32.mrb[43].mxu1 }
 0xbf5   :  { %v3589_v56 = vadd.f32 %v1279_v54, %v3518_v40  ;;  %v1287_v50 = vsel %vm59_vm0, %v3586_v52, 0.0 }
 0xbf6   :  { %1288 = vadd.xlane.f32.xlu1 %v1287_v50 }
 0xbf7   :  { %v1290_v42 = vsel %vm59_vm0, %v3589_v56, 0.0 }
 0xbfa   :  { %1291 = vadd.xlane.f32.xlu1 %v1290_v42 }
 0xc83   :  { %v1289_v57 = vpop.xlane.xlu1 %1288 }
 0xc84   :  { %v1293_v58 = vmul.f32 0.03125, %v1289_v57 }
 0xc86   :  { %v1295_v59 = vsub.f32 %v3586_v52, %v1293_v58 }
 0xc87   :  { %v1292_v60 = vpop.xlane.xlu1 %1291 }
 0xc88   :  { %v1294_v38 = vmul.f32 0.03125, %v1292_v60  ;;  %v1297_v62 = vmul.f32 %v1295_v59, %v1295_v59 }
 0xc8a   :  { %v1296_v63 = vsub.f32 %v3589_v56, %v1294_v38  ;;  %v1299_v40 = vsel %vm59_vm0, %v1297_v62, 0.0 }
 0xc8b   :  { %1300 = vadd.xlane.f32.xlu0 %v1299_v40 }
 0xc8c   :  { %v1298_v4 = vmul.f32 %v1296_v63, %v1296_v63 }
 0xc8e   :  { %v1302_v5 = vsel %vm59_vm0, %v1298_v4, 0.0 }
 0xc8f   :  { %1303 = vadd.xlane.f32.xlu1 %v1302_v5 }
 0xca1   :  { %1763 = vrot.lane.b32.xlu0 %v2644_v8, %s3241_s1 }
 0xd18   :  { %v1301_v9 = vpop.xlane.xlu0 %1300 }
 0xd19   :  { %v1305_v10 = vmul.f32 0.03125, %v1301_v9 }
 0xd1b   :  { %v1307_v53 = vadd.f32 1e-05, %v1305_v10 }
 0xd1c   :  { %v1304_v34 = vpop.xlane.xlu1 %1303 }
 0xd1d   :  { %3206 = vrsqrt.f32 %v1307_v53  ;;  %v1306_v11 = vmul.f32 0.03125, %v1304_v34 }
 0xd1f   :  { %v1308_v12 = vadd.f32 1e-05, %v1306_v11 }
 0xd21   :  { %3208 = vrsqrt.f32 %v1308_v12 }
 0xd27   :  { %v3207_v13 = vpop.eup %3206 }
 0xd28   :  { %v1311_v14 = vmul.f32 %v3207_v13, %v1295_v59 }
 0xd2a   :  { %v1317_v18 = vmul.f32 %v2637_v16, %v1311_v14 }
 0xd2b   :  { %v3209_v17 = vpop.eup %3208 }
 0xd2c   :  { %v1312_v19 = vmul.f32 %v3209_v17, %v1296_v63  ;;  %v1323_v23 = vadd.f32 %v2638_v21, %v1317_v18 }
 0xd2e   :  { %v1318_v22 = vmul.f32 %v2637_v16, %v1312_v19 }
 0xd30   :  { %v1324_v24 = vadd.f32 %v2638_v21, %v1318_v22 }
 0xd32   :  { %v3620_v27 = vpack.c.bf16 %v1324_v24, %v1323_v23 }
 0xd34   :  { %2995 = vmatmul.mubr.msk.bf16.vlgmr.msra.gmra.mrb[28].mxu0 %vm59_vm0, %v3620_v27 }
 0xd35   :  { %2999 = vmatpush3.bf16.msra.mxu0 %v3156_v26  ;;  %3002 = vmatprep.mubr.msk.bf16.mxu0 %vm3239_vm1, %v3238_v15 }
 0xd36   :  { %3000 = vmatprep.subr.bf16.mxu0 %v3238_v15 }
 0xd39   :  { %3001 = vmatpush3.bf16.msra.mxu0 %v3157_v61 }
 0xd3a   :  { %3006 = vmatprep.subr.bf16.mxu0 %v3238_v15 }
 0xd3c   :  { %3003 = vmatmul.mubr.msk.bf16.vlgmr.msra.gmra.mrb[32].mxu0 %vm59_vm0, %v3620_v27 }
 0xd3d   :  { %3007 = vmatpush3.bf16.msra.mxu0 %v3158_v2  ;;  %3010 = vmatprep.mubr.msk.bf16.mxu0 %vm3239_vm1, %v3238_v15 }
 0xd3e   :  { %3008 = vmatprep.subr.bf16.mxu0 %v3238_v15 }
 0xd41   :  { %3009 = vmatpush3.bf16.msra.mxu0 %v3159_v3 }
 0xd42   :  { %3014 = vmatprep.subr.bf16.mxu0 %v3238_v15 }
 0xd44   :  { %3011 = vmatmul.mubr.msk.bf16.vlgmr.msra.gmra.mrb[36].mxu0 %vm59_vm0, %v3620_v27 }
 0xd45   :  { %3016 = vmatprep.mubr.msk.bf16.mxu0 %vm3239_vm1, %v3238_v15 }
 0xe07   :  { %v1385_v28 = vpop.f32.mrb[28].mxu0 }
 0xe08   :  { %v2996_v29 = vpop.f32.mrb[29].mxu0  ;;  %v1386_v46 = vadd.f32 %v2644_v8, %v1385_v28  ;;  %v3160_v28 = vld [vmem:[%s3869_s2 + $0x90] sm:$0xff]  }
 0xe09   :  { %v1388_v30 = vpop.f32.mrb[30].mxu0 }
 0xe0a   :  { %v2997_v31 = vpop.f32.mrb[31].mxu0  ;;  %v1389_v49 = vadd.f32 %v2644_v8, %v1388_v30  ;;  %v1518_v55 = vpack.c.bf16 %v1386_v46, %v1386_v46 }
 0xe0c   :  { %v1519_v58 = vpack.c.bf16 %v1389_v49, %v1389_v49 }
 0xe0f   :  { %v1448_v33 = vpop.f32.mrb[32].mxu0 }
 0xe10   :  { %v1449_v35 = vadd.f32 %v3650_v32, %v1448_v33  ;;  %v3004_v36 = vpop.f32.mrb[33].mxu0  ;;  %v3162_v33 = vld [vmem:[%s3869_s2 + $0x98] sm:$0xff]  }
 0xe11   :  { %v1451_v37 = vpop.f32.mrb[34].mxu0  ;;  %v3163_v36 = vld [vmem:[%s3869_s2 + $0x78] sm:$0xff]  }
 0xe12   :  { %v1520_v39 = vpack.c.bf16 %v1449_v35, %v1449_v35  ;;  %v1452_v41 = vadd.f32 %v3650_v32, %v1451_v37  ;;  %v3005_v43 = vpop.f32.mrb[35].mxu0  ;;  %v3164_v37 = vld [vmem:[%s3869_s2 + $0xb0] sm:$0xff]  }
 0xe14   :  { %v1528_v44 = vsel %vm297_vm2, %v1520_v39, 0  ;;  %v1521_v45 = vpack.c.bf16 %v1452_v41, %v1452_v41  ;;  %v3165_v39 = vld [vmem:[%s3869_s2 + $0xb8] sm:$0xff]  }
 0xe15   :  { %3015 = vmatpush3.bf16.xpose.msra.mxu0 %v1528_v44 }
 0xe16   :  { %v1574_v47 = vsel %vm297_vm2, %v1521_v45, 0  ;;  %3026 = vmatprep.subr.bf16.mxu0 %v3238_v15 }
 0xe17   :  { %v1511_v48 = vpop.f32.mrb[36].mxu0  ;;  %3021 = vmatpush3.bf16.xpose.msra.mxu1 %v1574_v47 }
 0xe18   :  { %v1512_v1 = vadd.f32 %v3658_v0, %v1511_v48  ;;  %v3012_v51 = vpop.f32.mrb[37].mxu0  ;;  %3032 = vmatprep.subr.bf16.mxu1 %v3238_v15 }
 0xe19   :  { %v1514_v54 = vpop.f32.mrb[38].mxu0 }
 0xe1a   :  { %v1522_v50 = vpack.c.bf16 %v1512_v1, %v1512_v1  ;;  %v1515_v42 = vadd.f32 %v3658_v0, %v1514_v54  ;;  %v3013_v57 = vpop.f32.mrb[39].mxu0 }
 0xe1c   :  { %v1648_v59 = vsel %vm422_vm3, %v1522_v50, 0  ;;  %v1523_v60 = vpack.c.bf16 %v1515_v42, %v1515_v42  ;;  %3017 = vmatmul.mubr.msk.bf16.vlgmr.msra.gmra.mrb[40].mxu0 %vm297_vm2, %v1518_v55 }
 0xe1d   :  { %3027 = vmatpush3.bf16.msra.mxu0 %v1648_v59  ;;  %3028 = vmatprep.mubr.msk.bf16.mxu0 %vm3239_vm1, %v3238_v15  ;;  %v1764_v59 = vpop.permute.xlu0 %1763 }
 0xe1e   :  { %v1694_v38 = vsel %vm422_vm3, %v1523_v60, 0  ;;  %3023 = vmatmul.mubr.msk.bf16.vlgmr.msra.gmra.mrb[44].mxu1 %vm297_vm2, %v1519_v58  ;;  %3038 = vmatprep.subr.bf16.mxu0 %v3238_v15 }
 0xe1f   :  { %3033 = vmatpush3.bf16.msra.mxu1 %v1694_v38  ;;  %3034 = vmatprep.mubr.msk.bf16.mxu1 %vm3239_vm1, %v3238_v15 }
 0xe20   :  { %3046 = vmatprep.subr.bf16.mxu1 %v3238_v15 }
 0xeef   :  { %v1564_v62 = vpop.f32.mrb[40].mxu0 }
 0xef0   :  { %v3018_v63 = vpop.f32.mrb[41].mxu0  ;;  %v1616_v5 = vmul.f32 0.25, %v1564_v62 }
 0xef1   :  { %v1567_v40 = vpop.f32.mrb[42].mxu0  ;;  %v1610_v4 = vpop.f32.mrb[44].mxu1 }
 0xef2   :  { %v1617_v6 = vmul.f32 0.25, %v1610_v4  ;;  %v3019_v7 = vpop.f32.mrb[43].mxu0  ;;  %v3024_v8 = vpop.f32.mrb[45].mxu1  ;;  %v1618_v11 = vsel %vm3396_vm9, %v1616_v5, -1e+09 }
 0xef3   :  { %v1613_v9 = vpop.f32.mrb[46].mxu1  ;;  %v1620_v12 = vsel %vm394_vm10, %v1618_v11, -inf }
 0xef4   :  { %v3025_v10 = vpop.f32.mrb[47].mxu1  ;;  %v1619_v53 = vsel %vm3400_vm11, %v1617_v6, -1e+09 }
 0xef5   :  { %v1623_v34 = vsel %vm394_vm10, %v1619_v53, -inf }
 0xef6   :  { %1624 = vmax.xlane.f32.xlu1 %v1623_v34 }
 0xefa   :  { %1621 = vmax.xlane.f32.xlu1 %v1620_v12 }
 0xf83   :  { %v1625_v13 = vpop.xlane.xlu1 %1624 }
 0xf84   :  { %v1627_v14 = vsub.f32 %v1619_v53, %v1625_v13 }
 0xf86   :  { %v1630_v16 = vmul.f32 1.442695, %v1627_v14 }
 0xf87   :  { %v1622_v17 = vpop.xlane.xlu1 %1621 }
 0xf88   :  { %3210 = vpow2.f32 %v1630_v16  ;;  %v1626_v18 = vsub.f32 %v1618_v11, %v1622_v17 }
 0xf8a   :  { %v1628_v19 = vmul.f32 1.442695, %v1626_v18 }
 0xf8c   :  { %3212 = vpow2.f32 %v1628_v19 }
 0xf92   :  { %v3211_v21 = vpop.eup %3210 }
 0xf93   :  { %v1635_v22 = vsel %vm394_vm10, %v3211_v21, 0.0 }
 0xf94   :  { %1636 = vadd.xlane.f32.xlu1 %v1635_v22 }
 0xf96   :  { %v3213_v23 = vpop.eup %3212 }
 0xf97   :  { %v1632_v24 = vsel %vm394_vm10, %v3213_v23, 0.0 }
 0xf98   :  { %1633 = vadd.xlane.f32.xlu1 %v1632_v24 }
 0xfa9   :  { %1830 = vrot.lane.b32.xlu1 %v3650_v32, %s3241_s1  ;;  %v3161_v32 = vld [vmem:[%s3869_s2 + $0x70] sm:$0xff]  }
0x1021   :  { %v1637_v26 = vpop.xlane.xlu1 %1636 }
0x1022   :  { %3214 = vrcp.f32 %v1637_v26 }
0x1025   :  { %v1634_v61 = vpop.xlane.xlu1 %1633 }
0x1026   :  { %3216 = vrcp.f32 %v1634_v61 }
0x1029   :  { %v1831_v1 = vpop.permute.xlu1 %1830 }
0x102c   :  { %v3215_v2 = vpop.eup %3214 }
0x102d   :  { %v1641_v3 = vmul.f32 %v3215_v2, %v3211_v21 }
0x102f   :  { %v1643_v29 = vpack.c.bf16 %v1641_v3, %v1641_v3 }
0x1030   :  { %v3217_v30 = vpop.eup %3216 }
0x1031   :  { %v1640_v31 = vmul.f32 %v3217_v30, %v3213_v23  ;;  %3035 = vmatmul.mubr.msk.bf16.vlgmr.msra.gmra.mrb[48].mxu1 %vm394_vm10, %v1643_v29 }
0x1032   :  { %3047 = vmatpush3.bf16.msra.mxu1 %v3160_v28  ;;  %3050 = vmatprep.mubr.msk.bf16.mxu1 %vm3239_vm1, %v3238_v15 }
0x1033   :  { %v1642_v35 = vpack.c.bf16 %v1640_v31, %v1640_v31  ;;  %3048 = vmatprep.subr.bf16.mxu1 %v3238_v15 }
0x1035   :  { %3029 = vmatmul.mubr.msk.bf16.vlgmr.msra.gmra.mrb[44].mxu0 %vm394_vm10, %v1642_v35 }
0x1036   :  { %3039 = vmatpush3.bf16.msra.mxu0 %v3161_v32  ;;  %3049 = vmatpush3.bf16.msra.mxu1 %v3162_v33 }
0x1037   :  { %3040 = vmatprep.subr.bf16.mxu0 %v3238_v15  ;;  %3042 = vmatprep.mubr.msk.bf16.mxu0 %vm3239_vm1, %v3238_v15 }
0x1038   :  { %3062 = vmatprep.subr.bf16.mxu1 %v3238_v15 }
0x1039   :  { %3051 = vmatmul.mubr.msk.bf16.vlgmr.msra.gmra.mrb[52].mxu1 %vm59_vm0, %v3620_v27 }
0x103a   :  { %3041 = vmatpush3.bf16.msra.mxu0 %v3163_v36  ;;  %3064 = vmatprep.mubr.msk.bf16.mxu1 %vm3239_vm1, %v3238_v15 }
0x103b   :  { %3054 = vmatprep.subr.bf16.mxu0 %v3238_v15 }
0x103d   :  { %3043 = vmatmul.mubr.msk.bf16.vlgmr.msra.gmra.mrb[48].mxu0 %vm59_vm0, %v3620_v27 }
0x103e   :  { %3055 = vmatpush3.bf16.msra.mxu0 %v3164_v37  ;;  %3058 = vmatprep.mubr.msk.bf16.mxu0 %vm3239_vm1, %v3238_v15 }
0x103f   :  { %3056 = vmatprep.subr.bf16.mxu0 %v3238_v15 }
0x1042   :  { %3057 = vmatpush3.bf16.msra.mxu0 %v3165_v39 }
0x1043   :  { %3068 = vmatprep.subr.bf16.mxu0 %v3238_v15 }
0x1045   :  { %3059 = vmatmul.mubr.msk.bf16.vlgmr.msra.gmra.mrb[52].mxu0 %vm59_vm0, %v3620_v27 }
0x1046   :  { %3070 = vmatprep.mubr.msk.bf16.mxu0 %vm3239_vm1, %v3238_v15 }
0x1104   :  { %v3727_v41 = vpop.f32.mrb[48].mxu1 }
0x1105   :  { %v3036_v43 = vpop.f32.mrb[49].mxu1 }
0x1106   :  { %v1733_v44 = vpop.f32.mrb[50].mxu1 }
0x1107   :  { %v3037_v45 = vpop.f32.mrb[51].mxu1 }
0x1108   :  { %v3729_v46 = vpop.f32.mrb[44].mxu0 }
0x1109   :  { %v1736_v47 = vpack.c.bf16 %v3727_v41, %v3729_v46  ;;  %v3030_v48 = vpop.f32.mrb[45].mxu0 }
0x110a   :  { %v1687_v49 = vpop.f32.mrb[46].mxu0 }
0x110b   :  { %v3031_v51 = vpop.f32.mrb[47].mxu0 }
0x110c   :  { %v1867_v54 = vpop.f32.mrb[52].mxu1 }
0x110d   :  { %v1868_v55 = vadd.f32 %v1867_v54, %v1831_v1  ;;  %v3052_v27 = vpop.f32.mrb[53].mxu1 }
0x110e   :  { %v1870_v50 = vpop.f32.mrb[54].mxu1 }
0x110f   :  { %v1943_v42 = vpack.c.bf16 %v1868_v55, %v1868_v55  ;;  %v1871_v57 = vadd.f32 %v1870_v50, %v1831_v1  ;;  %v3053_v58 = vpop.f32.mrb[55].mxu1  ;;  %v3166_v50 = vld [vmem:[%s3872_s3 + $0x10] sm:$0xff]  }
0x1110   :  { %v1800_v60 = vpop.f32.mrb[48].mxu0 }
0x1111   :  { %v1951_v38 = vsel %vm297_vm2, %v1943_v42, 0  ;;  %v1944_v62 = vpack.c.bf16 %v1871_v57, %v1871_v57  ;;  %v3044_v63 = vpop.f32.mrb[49].mxu0  ;;  %v1801_v5 = vadd.f32 %v1800_v60, %v1764_v59  ;;  %v3167_v57 = vld [vmem:[%s3872_s3 + $0x18] sm:$0xff]  }
0x1112   :  { %v1803_v40 = vpop.f32.mrb[50].mxu0  ;;  %3063 = vmatpush3.bf16.xpose.msra.mxu1 %v1951_v38 }
0x1113   :  { %v1997_v4 = vsel %vm297_vm2, %v1944_v62, 0  ;;  %v3045_v6 = vpop.f32.mrb[51].mxu0  ;;  %3074 = vmatprep.subr.bf16.mxu1 %v3238_v15  ;;  %v1804_v7 = vadd.f32 %v1803_v40, %v1764_v59  ;;  %v1941_v8 = vpack.c.bf16 %v1801_v5, %v1801_v5 }
0x1114   :  { %3069 = vmatpush3.bf16.xpose.msra.mxu0 %v1997_v4 }
0x1115   :  { %3080 = vmatprep.subr.bf16.mxu0 %v3238_v15  ;;  %v1942_v10 = vpack.c.bf16 %v1804_v7, %v1804_v7 }
0x1118   :  { %v1934_v9 = vpop.f32.mrb[52].mxu0 }
0x1119   :  { %v3060_v53 = vpop.f32.mrb[53].mxu0  ;;  %3065 = vmatmul.mubr.msk.bf16.vlgmr.msra.gmra.mrb[56].mxu1 %vm297_vm2, %v1941_v8 }
0x111a   :  { %v1937_v34 = vpop.f32.mrb[54].mxu0  ;;  %3076 = vmatprep.mubr.msk.bf16.mxu1 %vm3239_vm1, %v3238_v15 }
0x111b   :  { %v3061_v11 = vpop.f32.mrb[55].mxu0  ;;  %3071 = vmatmul.mubr.msk.bf16.vlgmr.msra.gmra.mrb[56].mxu0 %vm297_vm2, %v1942_v10  ;;  %v2710_v10 = vld [vmem:[%s3870_s6 + $0xd] ss:$0 sm:$0xff] }
0x111c   :  { %3082 = vmatprep.mubr.msk.bf16.mxu0 %vm3239_vm1, %v3238_v15 }
0x11ec   :  { %v1987_v12 = vpop.f32.mrb[56].mxu1 }
0x11ed   :  { %v2039_v13 = vmul.f32 0.25, %v1987_v12  ;;  %v3066_v14 = vpop.f32.mrb[57].mxu1 }
0x11ee   :  { %v1990_v16 = vpop.f32.mrb[58].mxu1  ;;  %v2033_v17 = vpop.f32.mrb[56].mxu0 }
0x11ef   :  { %v2040_v18 = vmul.f32 0.25, %v2033_v17  ;;  %v3067_v19 = vpop.f32.mrb[59].mxu1  ;;  %v3072_v21 = vpop.f32.mrb[57].mxu0  ;;  %v2041_v22 = vsel %vm3396_vm9, %v2039_v13, -1e+09 }
0x11f0   :  { %v2036_v23 = vpop.f32.mrb[58].mxu0  ;;  %v2043_v24 = vsel %vm394_vm10, %v2041_v22, -inf }
0x11f1   :  { %v3073_v26 = vpop.f32.mrb[59].mxu0  ;;  %2044 = vmax.xlane.f32.xlu1 %v2043_v24  ;;  %v2042_v61 = vsel %vm3400_vm11, %v2040_v18, -1e+09 }
0x11f2   :  { %v2046_v2 = vsel %vm394_vm10, %v2042_v61, -inf }
0x11f3   :  { %2047 = vmax.xlane.f32.xlu0 %v2046_v2 }
0x127e   :  { %v2045_v3 = vpop.xlane.xlu1 %2044 }
0x127f   :  { %v2049_v28 = vsub.f32 %v2041_v22, %v2045_v3  ;;  %v3168_v3 = vld [vmem:[%s3873_s4 + $0x10] sm:$0xff]  }
0x1280   :  { %v2048_v29 = vpop.xlane.xlu0 %2047 }
0x1281   :  { %v2051_v30 = vmul.f32 1.442695, %v2049_v28  ;;  %v2050_v31 = vsub.f32 %v2042_v61, %v2048_v29  ;;  %v3169_v28 = vld [vmem:[%s3873_s4 + $0x18] sm:$0xff]  }
0x1283   :  { %3218 = vpow2.f32 %v2051_v30  ;;  %v2053_v32 = vmul.f32 1.442695, %v2050_v31 }
0x1285   :  { %3220 = vpow2.f32 %v2053_v32 }
0x128d   :  { %v3219_v20 = vpop.eup %3218 }
0x128e   :  { %v2055_v33 = vsel %vm394_vm10, %v3219_v20, 0.0 }
0x128f   :  { %v3221_v35 = vpop.eup %3220  ;;  %2056 = vadd.xlane.f32.xlu1 %v2055_v33 }
0x1290   :  { %v2058_v36 = vsel %vm394_vm10, %v3221_v35, 0.0 }
0x1293   :  { %2059 = vadd.xlane.f32.xlu1 %v2058_v36 }
0x12a4   :  { %1897 = vrot.lane.b32.xlu1 %v3658_v0, %s3241_s1 }
0x131c   :  { %v2057_v25 = vpop.xlane.xlu1 %2056 }
0x131d   :  { %3222 = vrcp.f32 %v2057_v25  ;;  %v2713_v25 = vld [vmem:[%s3870_s6 + $0xe] ss:$0 sm:$0xff] }
0x1320   :  { %v2060_v37 = vpop.xlane.xlu1 %2059 }
0x1321   :  { %3224 = vrcp.f32 %v2060_v37 }
0x1324   :  { %v1898_v39 = vpop.permute.xlu1 %1897 }
0x1325   :  { %v1935_v43 = vadd.f32 %v1934_v9, %v1898_v39  ;;  %v1938_v44 = vadd.f32 %v1937_v34, %v1898_v39 }
0x1327   :  { %v3223_v45 = vpop.eup %3222  ;;  %v1945_v48 = vpack.c.bf16 %v1935_v43, %v1935_v43  ;;  %v1946_v49 = vpack.c.bf16 %v1938_v44, %v1938_v44  ;;  %v2714_v44 = vld [vmem:[%s3870_s6 + $0xf] ss:$0 sm:$0xff] }
0x1328   :  { %v2063_v1 = vmul.f32 %v3223_v45, %v3219_v20 }
0x1329   :  { %v2071_v51 = vsel %vm422_vm3, %v1945_v48, 0  ;;  %v2117_v54 = vsel %vm422_vm3, %v1946_v49, 0 }
0x132a   :  { %3075 = vmatpush3.bf16.msra.mxu1 %v2071_v51  ;;  %3081 = vmatpush3.bf16.msra.mxu0 %v2117_v54  ;;  %v2065_v55 = vpack.c.bf16 %v2063_v1, %v2063_v1  ;;  %v3170_v51 = vld [vmem:[%s3874_s5 + $0x40] sm:$0xff]   ;;  %v3171_v54 = vld [vmem:[%s3874_s5 + $0x48] sm:$0xff]  }
0x132b   :  { %v3225_v27 = vpop.eup %3224  ;;  %3092 = vmatprep.subr.bf16.mxu0 %v3238_v15  ;;  %3086 = vmatprep.subr.bf16.mxu1 %v3238_v15 }
0x132c   :  { %v2064_v0 = vmul.f32 %v3225_v27, %v3221_v35  ;;  %v3173_v27 = vld [vmem:[%s3874_s5 + $0x58] sm:$0xff]  }
0x132d   :  { %3077 = vmatmul.mubr.msk.bf16.vlgmr.msra.gmra.mrb[60].mxu1 %vm394_vm10, %v2065_v55  ;;  %v3172_v55 = vld [vmem:[%s3874_s5 + $0x50] sm:$0xff]  }
0x132e   :  { %v2066_v42 = vpack.c.bf16 %v2064_v0, %v2064_v0  ;;  %3088 = vmatprep.mubr.msk.bf16.mxu1 %vm3239_vm1, %v3238_v15  ;;  %3087 = vmatpush3.bf16.msra.mxu1 %v3167_v57  ;;  %v3174_v0 = vld [vmem:[%s3874_s5 + $0x60] sm:$0xff]   ;;  %v3177_v57 = vld [vmem:[%s3874_s5 + $0x78] sm:$0xff]  }
0x132f   :  { %3098 = vmatprep.subr.bf16.mxu1 %v3238_v15 }
0x1330   :  { %3083 = vmatmul.mubr.msk.bf16.vlgmr.msra.gmra.mrb[60].mxu0 %vm394_vm10, %v2066_v42  ;;  %v3176_v42 = vld [vmem:[%s3874_s5 + $0x70] sm:$0xff]  }
0x1331   :  { %3093 = vmatpush3.bf16.msra.mxu0 %v3166_v50  ;;  %3094 = vmatprep.mubr.msk.bf16.mxu0 %vm3239_vm1, %v3238_v15  ;;  %v3175_v50 = vld [vmem:[%s3874_s5 + $0x68] sm:$0xff]  }
0x1332   :  { %3106 = vmatprep.subr.bf16.mxu0 %v3238_v15 }
0x1338   :  { %3095 = vmatmul.mubr.msk.bf16.vlgmr.msra.gmra.mrb[64].mxu0 %vm297_vm2, %v1736_v47 }
0x1339   :  { %3122 = vmatprep.mubr.msk.bf16.mxu0 %vm3239_vm1, %v3238_v15  ;;  %3107 = vmatpush3.bf16.msra.mxu0 %v3170_v51  ;;  %v2753_v51 = vld [vmem:[%s3870_s6 + $0x11] ss:$0 sm:$0xff] }
0x133a   :  { %3108 = vmatprep.subr.bf16.mxu0 %v3238_v15 }
0x133d   :  { %3109 = vmatpush3.bf16.msra.mxu0 %v3171_v54 }
0x133e   :  { %3110 = vmatprep.subr.bf16.mxu0 %v3238_v15 }
0x1341   :  { %3111 = vmatpush3.bf16.msra.mxu0 %v3172_v55 }
0x1342   :  { %3112 = vmatprep.subr.bf16.mxu0 %v3238_v15 }
0x1345   :  { %3113 = vmatpush3.bf16.msra.mxu0 %v3173_v27 }
0x1346   :  { %3114 = vmatprep.subr.bf16.mxu0 %v3238_v15 }
0x1349   :  { %3115 = vmatpush3.bf16.msra.mxu0 %v3174_v0 }
0x134a   :  { %3116 = vmatprep.subr.bf16.mxu0 %v3238_v15 }
0x134d   :  { %3117 = vmatpush3.bf16.msra.mxu0 %v3175_v50 }
0x134e   :  { %3118 = vmatprep.subr.bf16.mxu0 %v3238_v15 }
0x1351   :  { %3119 = vmatpush3.bf16.msra.mxu0 %v3176_v42 }
0x1352   :  { %3120 = vmatprep.subr.bf16.mxu0 %v3238_v15 }
0x1355   :  { %3121 = vmatpush3.bf16.msra.mxu0 %v3177_v57 }
0x1400   :  { %v2107_v58 = vpop.f32.mrb[60].mxu1 }
0x1401   :  { %v3078_v59 = vpop.f32.mrb[61].mxu1 }
0x1402   :  { %v2110_v60 = vpop.f32.mrb[62].mxu1 }
0x1403   :  { %v3079_v38 = vpop.f32.mrb[63].mxu1  ;;  %v2153_v62 = vpop.f32.mrb[60].mxu0 }
0x1404   :  { %v2159_v63 = vpack.c.bf16 %v2153_v62, %v2107_v58  ;;  %v3084_v40 = vpop.f32.mrb[61].mxu0  ;;  %v2720_v58 = vld [vmem:[%s3875_s7 + $0x2] ss:$0 sm:$0xff] }
0x1405   :  { %v2156_v41 = vpop.f32.mrb[62].mxu0 }
0x1406   :  { %v3085_v46 = vpop.f32.mrb[63].mxu0  ;;  %3089 = vmatmul.mubr.msk.bf16.vlgmr.msra.gmra.mrb[64].mxu1 %vm297_vm2, %v2159_v63 }
0x1407   :  { %3102 = vmatprep.mubr.msk.bf16.mxu1 %vm3239_vm1, %v3238_v15  ;;  %3099 = vmatpush3.bf16.msra.mxu1 %v3168_v3 }
0x1408   :  { %3100 = vmatprep.subr.bf16.mxu1 %v3238_v15 }
0x140b   :  { %v2256_v47 = vpop.f32.mrb[64].mxu0  ;;  %3101 = vmatpush3.bf16.msra.mxu1 %v3169_v28 }
0x140c   :  { %v3096_v4 = vpop.f32.mrb[65].mxu0 }
0x140d   :  { %v2259_v5 = vpop.f32.mrb[66].mxu0 }
0x140e   :  { %v3097_v6 = vpop.f32.mrb[67].mxu0 }
0x14d9   :  { %v2206_v7 = vpop.f32.mrb[64].mxu1 }
0x14da   :  { %v2257_v8 = vadd.f32 %v2256_v47, %v2206_v7  ;;  %v3090_v9 = vpop.f32.mrb[65].mxu1 }
0x14db   :  { %v2209_v53 = vpop.f32.mrb[66].mxu1 }
0x14dc   :  { %v2263_v34 = vadd.f32 %v2257_v8, %v3586_v52  ;;  %v2260_v11 = vadd.f32 %v2259_v5, %v2209_v53  ;;  %v3091_v12 = vpop.f32.mrb[67].mxu1 }
0x14de   :  { %v3784_v13 = vadd.f32 %v2710_v10, %v2263_v34  ;;  %v2264_v14 = vadd.f32 %v2260_v11, %v3589_v56 }
0x14e0   :  { %v3787_v16 = vadd.f32 %v2710_v10, %v2264_v14  ;;  %v2274_v17 = vsel %vm59_vm0, %v3784_v13, 0.0 }
0x14e1   :  { %2275 = vadd.xlane.f32.xlu0 %v2274_v17 }
0x14e2   :  { %v2277_v18 = vsel %vm59_vm0, %v3787_v16, 0.0 }
0x14e5   :  { %2278 = vadd.xlane.f32.xlu0 %v2277_v18 }
0x156e   :  { %v2276_v19 = vpop.xlane.xlu0 %2275 }
0x156f   :  { %v2280_v21 = vmul.f32 0.03125, %v2276_v19 }
0x1571   :  { %v2282_v52 = vsub.f32 %v3784_v13, %v2280_v21  ;;  %v2741_v21 = vld [vmem:[%s3875_s7 + $0x3] ss:$0 sm:$0xff] }
0x1572   :  { %v2279_v22 = vpop.xlane.xlu0 %2278 }
0x1573   :  { %v2281_v23 = vmul.f32 0.03125, %v2279_v22  ;;  %v2284_v24 = vmul.f32 %v2282_v52, %v2282_v52 }
0x1575   :  { %v2283_v26 = vsub.f32 %v3787_v16, %v2281_v23  ;;  %v2286_v56 = vsel %vm59_vm0, %v2284_v24, 0.0 }
0x1576   :  { %2287 = vadd.xlane.f32.xlu0 %v2286_v56 }
0x1577   :  { %v2285_v61 = vmul.f32 %v2283_v26, %v2283_v26 }
0x1579   :  { %v2289_v2 = vsel %vm59_vm0, %v2285_v61, 0.0 }
0x157a   :  { %2290 = vadd.xlane.f32.xlu0 %v2289_v2 }
0x1603   :  { %v2288_v29 = vpop.xlane.xlu0 %2287 }
0x1604   :  { %v2292_v30 = vmul.f32 0.03125, %v2288_v29 }
0x1606   :  { %v2294_v31 = vadd.f32 1e-05, %v2292_v30 }
0x1607   :  { %v2291_v32 = vpop.xlane.xlu0 %2290 }
0x1608   :  { %3226 = vrsqrt.f32 %v2294_v31  ;;  %v2293_v20 = vmul.f32 0.03125, %v2291_v32 }
0x160a   :  { %v2295_v33 = vadd.f32 1e-05, %v2293_v20 }
0x160c   :  { %3228 = vrsqrt.f32 %v2295_v33 }
0x1612   :  { %v3227_v35 = vpop.eup %3226 }
0x1613   :  { %v2298_v36 = vmul.f32 %v3227_v35, %v2282_v52 }
0x1615   :  { %v2304_v39 = vmul.f32 %v2713_v25, %v2298_v36 }
0x1616   :  { %v3229_v37 = vpop.eup %3228 }
0x1617   :  { %v2299_v43 = vmul.f32 %v3229_v37, %v2283_v26  ;;  %v2310_v48 = vadd.f32 %v2714_v44, %v2304_v39 }
0x1619   :  { %v2305_v45 = vmul.f32 %v2713_v25, %v2299_v43 }
0x161b   :  { %v2311_v49 = vadd.f32 %v2714_v44, %v2305_v45 }
0x161d   :  { %v2312_v1 = vpack.c.bf16 %v2311_v49, %v2310_v48  ;;  %v2752_v49 = vld [vmem:[%s3870_s6 + $0x10] ss:$0 sm:$0xff] }
0x161f   :  { %3103 = vmatmul.mubr.msk.bf16.vlgmr.msra.gmra.mrb[68].mxu1 %vm59_vm0, %v2312_v1 }
0x16f2   :  { %v2373_v59 = vpop.f32.mrb[68].mxu1 }
0x16f3   :  { %v2374_v60 = vadd.f32 %v2720_v58, %v2373_v59  ;;  %v3104_v38 = vpop.f32.mrb[69].mxu1 }
0x16f4   :  { %v2376_v62 = vpop.f32.mrb[70].mxu1 }
0x16f5   :  { %v2382_v63 = vmul.f32 0.044715, %v2374_v60  ;;  %v2377_v40 = vadd.f32 %v2720_v58, %v2376_v62  ;;  %v3105_v41 = vpop.f32.mrb[71].mxu1  ;;  %v2380_v11 = vmul.f32 0.5, %v2374_v60 }
0x16f7   :  { %v2384_v46 = vmul.f32 %v2382_v63, %v2374_v60  ;;  %v2383_v47 = vmul.f32 0.044715, %v2377_v40  ;;  %v2381_v12 = vmul.f32 0.5, %v2377_v40 }
0x16f9   :  { %v2386_v4 = vmul.f32 %v2384_v46, %v2374_v60  ;;  %v2385_v5 = vmul.f32 %v2383_v47, %v2377_v40 }
0x16fb   :  { %v2388_v6 = vadd.f32 %v2386_v4, %v2374_v60  ;;  %v2387_v7 = vmul.f32 %v2385_v5, %v2377_v40 }
0x16fd   :  { %v2390_v8 = vmul.f32 0.7978846, %v2388_v6  ;;  %v2389_v15 = vadd.f32 %v2387_v7, %v2377_v40 }
0x16ff   :  { %3230 = vtanh.f32 %v2390_v8  ;;  %v2391_v9 = vmul.f32 0.7978846, %v2389_v15 }
0x1701   :  { %3232 = vtanh.f32 %v2391_v9 }
0x1709   :  { %v3231_v10 = vpop.eup %3230 }
0x170a   :  { %v2394_v53 = vadd.f32 1.0, %v3231_v10 }
0x170b   :  { %v3233_v34 = vpop.eup %3232 }
0x170c   :  { %v2395_v14 = vadd.f32 1.0, %v3233_v34  ;;  %v2396_v17 = vmul.f32 %v2394_v53, %v2380_v11 }
0x170e   :  { %v2397_v18 = vmul.f32 %v2395_v14, %v2381_v12 }
0x1710   :  { %v2398_v19 = vpack.c.bf16 %v2397_v18, %v2396_v17 }
0x1712   :  { %3123 = vmatmul.mubr.bf16.vlgmr.msra.gmra.mrb[68].mxu0 %v2398_v19 }
0x17e5   :  { %v2503_v52 = vpop.f32.mrb[68].mxu0 }
0x17e6   :  { %v2504_v22 = vadd.f32 %v2741_v21, %v2503_v52  ;;  %v3124_v23 = vpop.f32.mrb[69].mxu0 }
0x17e7   :  { %v2506_v24 = vpop.f32.mrb[70].mxu0 }
0x17e8   :  { %v2507_v26 = vadd.f32 %v2741_v21, %v2506_v24  ;;  %v3125_v56 = vpop.f32.mrb[71].mxu0  ;;  %v2510_v61 = vadd.f32 %v2504_v22, %v3784_v13 }
0x17ea   :  { %v2515_v2 = vsel %vm59_vm0, %v2510_v61, 0.0  ;;  %v2511_v3 = vadd.f32 %v2507_v26, %v3787_v16 }
0x17eb   :  { %2516 = vadd.xlane.f32.xlu0 %v2515_v2 }
0x17ec   :  { %v2518_v28 = vsel %vm59_vm0, %v2511_v3, 0.0 }
0x17ed   :  { %2519 = vadd.xlane.f32.xlu1 %v2518_v28 }
0x1878   :  { %v2517_v29 = vpop.xlane.xlu0 %2516 }
0x1879   :  { %v2521_v30 = vmul.f32 0.03125, %v2517_v29 }
0x187a   :  { %v2520_v31 = vpop.xlane.xlu1 %2519 }
0x187b   :  { %v2523_v32 = vsub.f32 %v2510_v61, %v2521_v30  ;;  %v2522_v20 = vmul.f32 0.03125, %v2520_v31 }
0x187d   :  { %v2524_v33 = vsub.f32 %v2511_v3, %v2522_v20  ;;  %v2525_v35 = vmul.f32 %v2523_v32, %v2523_v32 }
0x187f   :  { %v2527_v36 = vsel %vm59_vm0, %v2525_v35, 0.0  ;;  %v2526_v25 = vmul.f32 %v2524_v33, %v2524_v33 }
0x1880   :  { %2528 = vadd.xlane.f32.xlu0 %v2527_v36 }
0x1881   :  { %v2530_v13 = vsel %vm59_vm0, %v2526_v25, 0.0 }
0x1884   :  { %2531 = vadd.xlane.f32.xlu0 %v2530_v13 }
0x190d   :  { %v2529_v37 = vpop.xlane.xlu0 %2528 }
0x190e   :  { %v2533_v16 = vmul.f32 0.03125, %v2529_v37 }
0x1910   :  { %v2535_v39 = vadd.f32 1e-05, %v2533_v16 }
0x1911   :  { %v2532_v43 = vpop.xlane.xlu0 %2531 }
0x1912   :  { %3234 = vrsqrt.f32 %v2535_v39  ;;  %v2534_v44 = vmul.f32 0.03125, %v2532_v43 }
0x1914   :  { %v2536_v45 = vadd.f32 1e-05, %v2534_v44 }
0x1916   :  { %3236 = vrsqrt.f32 %v2536_v45 }
0x191c   :  { %v3235_v48 = vpop.eup %3234 }
0x191d   :  { %v2539_v1 = vmul.f32 %v3235_v48, %v2523_v32 }
0x191f   :  { %v2545_v54 = vmul.f32 %v2752_v49, %v2539_v1 }
0x1920   :  { %v3237_v55 = vpop.eup %3236 }
0x1921   :  { %v2551_v27 = vadd.f32 %v2753_v51, %v2545_v54  ;;  %v2540_v0 = vmul.f32 %v3237_v55, %v2524_v33 }
0x1923   :  { %2553 = vst.msk [vmem:[%s3876_s8] sm:$0xff] %vm59_vm0, %v2551_v27  ;;  %v2546_v50 = vmul.f32 %v2752_v49, %v2540_v0 }
0x1925   :  { %v2552_v42 = vadd.f32 %v2753_v51, %v2546_v50 }
0x1927   :  { %2554 = vst.msk [vmem:[%s3876_s8 + $0x8] sm:$0xff] %vm59_vm0, %v2552_v42 }

</bundles_post_ra>
